<compile_context>
chip_gen: v7x
topology: tpu7x:2x2x1
jax: 0.10.0
libtpu: 0.0.40
codegen_flags: <defaults>
</compile_context>

<pallas_src>
import jax
import jax.numpy as jnp
import numpy as np
from jax.experimental import pallas as pl
from jax.experimental.pallas import tpu as pltpu


def gru_disc_kernel(x_ref, bias_r_ref, bias_z_ref, bias_n_ref,
                    wih_r_ref, wih_z_ref, wih_n_ref,
                    whh_r_ref, whh_z_ref, whh_n_ref, bhh_n_ref,
                    whead_ref, bhead_ref,
                    o_ref,
                    gi_r_scr, gi_z_scr, gi_n_scr, hs_scr):
    """Whole sequence in one invocation.

    x_ref      : (W*Bp, In)   time-major input, batch padded to Bp (multiple of 8)
    bias_*_ref : (Bp, H)      per-batch gate bias = y*w_ih[:, -1] + b_ih (+ b_hh for r,z)
    wih_*_ref  : (In, H)      per-gate input->hidden weights (x-feature part only)
    whh_*_ref  : (H, H)       per-gate hidden->hidden weights
    bhh_n_ref  : (1, H)       hidden bias of the n gate (scaled by r -> kept separate)
    whead_ref  : (1, H)       folded head = W_lin.T @ w_out.T  (Linear(H,H) ∘ Linear(H,1))
    bhead_ref  : (1, 1)       folded head bias = b_lin @ w_out.T + b_out
    o_ref      : (W, Bp)      sigmoid outputs, time-major
    scratch    : gi_r/gi_z/gi_n/hs, each (W, Bp, H) VMEM
    """
    Wt, Bp, H = hs_scr.shape
    x_flat = x_ref[...]                                  # (W*Bp, In)

    # ---- hoisted input projection: one matmul per gate over ALL timesteps ----
    def proj(w_ref, b_ref):
        g = jnp.dot(x_flat, w_ref[...], preferred_element_type=jnp.float32)   # (W*Bp, H)
        return g.reshape(Wt, Bp, H) + b_ref[...][None]   # add fused per-batch bias

    gi_r_scr[...] = proj(wih_r_ref, bias_r_ref)
    gi_z_scr[...] = proj(wih_z_ref, bias_z_ref)
    gi_n_scr[...] = proj(wih_n_ref, bias_n_ref)

    w_hh_r = whh_r_ref[...]
    w_hh_z = whh_z_ref[...]
    w_hh_n = whh_n_ref[...]
    b_hh_n = bhh_n_ref[...]                              # (1, H)

    # ---- sequential recurrence: only h @ W_hh remains on the critical path ----
    def step(t, h):
        gh_r = jnp.dot(h, w_hh_r, preferred_element_type=jnp.float32)
        gh_z = jnp.dot(h, w_hh_z, preferred_element_type=jnp.float32)
        gh_n = jnp.dot(h, w_hh_n, preferred_element_type=jnp.float32) + b_hh_n
        r = jax.nn.sigmoid(gi_r_scr[t] + gh_r)
        zg = jax.nn.sigmoid(gi_z_scr[t] + gh_z)
        n = jnp.tanh(gi_n_scr[t] + r * gh_n)
        h_new = (1.0 - zg) * n + zg * h
        hs_scr[t] = h_new
        return h_new

    h0 = jnp.zeros((Bp, H), jnp.float32)
    jax.lax.fori_loop(0, Wt, step, h0, unroll=True)

    # ---- folded output head, out of the time loop: multiply + lane reduce ----
    hs = hs_scr[...]                                     # (W, Bp, H)
    logit = jnp.sum(hs * whead_ref[...][None], axis=-1) + bhead_ref[...]   # (W, Bp)
    o_ref[...] = jax.nn.sigmoid(logit)


def rnn_discriminator_forward(x, y, params):
    """Pallas forward of RnnDiscriminator. x: (B, W, input_size), y: (B,) -> (B*W,)."""
    B, Wt, In = x.shape
    H = params["w_hh"].shape[1]
    Bp = ((B + 7) // 8) * 8                              # pad batch to a sublane multiple

    x_tm = jnp.transpose(x.astype(jnp.float32), (1, 0, 2))       # (W, B, In) time-major
    x_tm = jnp.pad(x_tm, ((0, 0), (0, Bp - B), (0, 0)))
    x_flat = x_tm.reshape(Wt * Bp, In)
    y_p = jnp.pad(y.astype(jnp.float32), (0, Bp - B))

    w_ih, w_hh = params["w_ih"], params["w_hh"]          # (3H, In+1), (3H, H); gate order [r,z,n]
    b_ih, b_hh = params["b_ih"], params["b_hh"]

    def gate(i):
        return slice(i * H, (i + 1) * H)

    wih_T, wy, whh_T = [], [], []
    for g in range(3):
        Wg = w_ih[gate(g)]                               # (H, In+1)
        wih_T.append(Wg[:, :In].T)                       # (In, H)  x-feature part
        wy.append(Wg[:, In])                             # (H,)     y-channel column
        whh_T.append(w_hh[gate(g)].T)                    # (H, H)

    # fold broadcast conditioning channel y + GRU biases into per-batch gate biases
    bias_r = y_p[:, None] * wy[0][None, :] + (b_ih[gate(0)] + b_hh[gate(0)])[None, :]
    bias_z = y_p[:, None] * wy[1][None, :] + (b_ih[gate(1)] + b_hh[gate(1)])[None, :]
    bias_n = y_p[:, None] * wy[2][None, :] + b_ih[gate(2)][None, :]   # b_hh_n stays separate
    bhh_n = b_hh[gate(2)][None, :]                       # (1, H)

    # fold Linear(H,H) followed by Linear(H,1):
    #   (h @ Wl.T + bl) @ Wo.T + bo == h @ (Wl.T @ Wo.T) + (bl @ Wo.T + bo)
    w_head = (params["w_lin"].T @ params["w_out"].T).reshape(1, H)       # (1, H)
    b_head = (params["b_lin"] @ params["w_out"].T + params["b_out"]).reshape(1, 1)

    vmem = pltpu.MemorySpace.VMEM
    out_tm = pl.pallas_call(
        gru_disc_kernel,
        out_shape=jax.ShapeDtypeStruct((Wt, Bp), jnp.float32),
        in_specs=[pl.BlockSpec(memory_space=vmem)] * 13,
        out_specs=pl.BlockSpec(memory_space=vmem),
        scratch_shapes=[pltpu.VMEM((Wt, Bp, H), jnp.float32) for _ in range(4)],
    )(x_flat, bias_r, bias_z, bias_n,
      wih_T[0], wih_T[1], wih_T[2],
      whh_T[0], whh_T[1], whh_T[2], bhh_n,
      w_head, b_head)

    # (W, Bp) -> drop batch padding -> (B, W) -> flatten (matches torch .flatten() order)
    return jnp.transpose(out_tm[:, :B], (1, 0)).reshape(B * Wt)


def reference_forward(x, y, params):
    """Pure-JAX reference matching PyTorch GRU(batch_first) + Linear + Linear + sigmoid."""
    B, Wt, In = x.shape
    H = params["w_hh"].shape[1]
    y_rep = jnp.broadcast_to(y[:, None, None].astype(x.dtype), (B, Wt, 1))
    xc = jnp.concatenate([x, y_rep], axis=2)
    w_ih, w_hh = params["w_ih"], params["w_hh"]
    b_ih, b_hh = params["b_ih"], params["b_hh"]

    def step(h, x_t):
        gi = x_t @ w_ih.T + b_ih
        gh = h @ w_hh.T + b_hh
        i_r, i_z, i_n = jnp.split(gi, 3, axis=-1)
        h_r, h_z, h_n = jnp.split(gh, 3, axis=-1)
        r = jax.nn.sigmoid(i_r + h_r)
        zg = jax.nn.sigmoid(i_z + h_z)
        n = jnp.tanh(i_n + r * h_n)
        h_new = (1.0 - zg) * n + zg * h
        return h_new, h_new

    h0 = jnp.zeros((B, H), jnp.float32)
    _, hs = jax.lax.scan(step, h0, jnp.transpose(xc, (1, 0, 2)))
    hs = jnp.transpose(hs, (1, 0, 2))                    # (B, W, H)
    lin = hs @ params["w_lin"].T + params["b_lin"]       # (B, W, H)
    logit = lin @ params["w_out"].T + params["b_out"]    # (B, W, 1)
    return jax.nn.sigmoid(logit).reshape(-1)


def init_params(key, Q, H):
    """Deterministic synthetic init mirroring nn.GRU / nn.Linear shapes."""
    k = jax.random.split(key, 8)
    s = 1.0 / np.sqrt(H)
    u = lambda kk, shape: jax.random.uniform(kk, shape, jnp.float32, -s, s)
    return {
        "w_ih": u(k[0], (3 * H, Q)),     # weight_ih_l0, gate order [r, z, n]
        "w_hh": u(k[1], (3 * H, H)),     # weight_hh_l0
        "b_ih": u(k[2], (3 * H,)),       # bias_ih_l0
        "b_hh": u(k[3], (3 * H,)),       # bias_hh_l0
        "w_lin": u(k[4], (H, H)),        # RNN_Block linear: hidden -> hidden
        "b_lin": u(k[5], (H,)),
        "w_out": u(k[6], (1, H)),        # out: Linear(hidden, 1)   (W=None branch)
        "b_out": u(k[7], (1,)),
    }


if __name__ == "__main__":
    B, Wt, IN_SIZE, H = 2, 8, 4, 32
    Q = IN_SIZE + 1                       # input_size + 1 (label channel concatenated)

    key = jax.random.PRNGKey(0)
    kx, ky, kp = jax.random.split(key, 3)
    x = jax.random.normal(kx, (B, Wt, IN_SIZE), jnp.float32)   # data / generator output
    y = jax.random.normal(ky, (B,), jnp.float32)               # conditioning label
    params = init_params(kp, Q, H)

    out = jax.block_until_ready(rnn_discriminator_forward(x, y, params))
    ref = jax.block_until_ready(reference_forward(x, y, params))

    assert out.shape == (B * Wt,), out.shape
    np.testing.assert_allclose(np.asarray(out), np.asarray(ref),
                               rtol=1e-5, atol=1e-5)
    print("KERNEL_OK")
</pallas_src>

<mosaic_0001>
module attributes {stable_mosaic.version = 11 : i64} {
  func.func @gru_disc_kernel(%arg0: memref<64x4xf32, #tpu.memory_space<vmem>>, %arg1: memref<8x32xf32, #tpu.memory_space<vmem>>, %arg2: memref<8x32xf32, #tpu.memory_space<vmem>>, %arg3: memref<8x32xf32, #tpu.memory_space<vmem>>, %arg4: memref<4x32xf32, #tpu.memory_space<vmem>>, %arg5: memref<4x32xf32, #tpu.memory_space<vmem>>, %arg6: memref<4x32xf32, #tpu.memory_space<vmem>>, %arg7: memref<32x32xf32, #tpu.memory_space<vmem>>, %arg8: memref<32x32xf32, #tpu.memory_space<vmem>>, %arg9: memref<32x32xf32, #tpu.memory_space<vmem>>, %arg10: memref<1x32xf32, #tpu.memory_space<vmem>>, %arg11: memref<1x32xf32, #tpu.memory_space<vmem>>, %arg12: memref<1x1xf32, #tpu.memory_space<vmem>>, %arg13: memref<8x8xf32, #tpu.memory_space<vmem>>, %arg14: memref<8x8x32xf32, #tpu.memory_space<vmem>>, %arg15: memref<8x8x32xf32, #tpu.memory_space<vmem>>, %arg16: memref<8x8x32xf32, #tpu.memory_space<vmem>>, %arg17: memref<8x8x32xf32, #tpu.memory_space<vmem>>) attributes {dimension_semantics = [], scalar_prefetch = 0 : i64, scratch_operands = 4 : i64, tpu.core_type = #tpu.core_type<tc>} {
    %c0 = arith.constant 0 : index
    %c0_0 = arith.constant 0 : index
    %0 = vector.load %arg0[%c0, %c0_0] : memref<64x4xf32, #tpu.memory_space<vmem>>, vector<64x4xf32>
    %c0_1 = arith.constant 0 : index
    %c0_2 = arith.constant 0 : index
    %1 = vector.load %arg4[%c0_1, %c0_2] : memref<4x32xf32, #tpu.memory_space<vmem>>, vector<4x32xf32>
    %cst = arith.constant dense<0.000000e+00> : vector<64x32xf32>
    %2 = tpu.matmul %0, %1, %cst {dimension_numbers = #tpu.dot_dimension_numbers<[1], [0], [0], [1], [0, 0, 1, 1], [], []>} : vector<64x4xf32>, vector<4x32xf32>, vector<64x32xf32> -> vector<64x32xf32>
    %3 = vector.shape_cast %2 : vector<64x32xf32> to vector<8x8x32xf32>
    %c0_3 = arith.constant 0 : index
    %c0_4 = arith.constant 0 : index
    %4 = vector.load %arg1[%c0_3, %c0_4] : memref<8x32xf32, #tpu.memory_space<vmem>>, vector<8x32xf32>
    %5 = vector.shape_cast %4 : vector<8x32xf32> to vector<1x8x32xf32>
    %6 = vector.broadcast %5 : vector<1x8x32xf32> to vector<8x8x32xf32>
    %7 = arith.addf %3, %6 : vector<8x8x32xf32>
    %c0_5 = arith.constant 0 : index
    %c0_6 = arith.constant 0 : index
    %c0_7 = arith.constant 0 : index
    %8 = vector.load %arg14[%c0_5, %c0_6, %c0_7] : memref<8x8x32xf32, #tpu.memory_space<vmem>>, vector<8x8x32xf32>
    tpu.vector_store %arg14[%c0_5, %c0_6, %c0_7], %7 {strides = array<i32>} : memref<8x8x32xf32, #tpu.memory_space<vmem>>, vector<8x8x32xf32>,
    %c0_8 = arith.constant 0 : index
    %c0_9 = arith.constant 0 : index
    %9 = vector.load %arg5[%c0_8, %c0_9] : memref<4x32xf32, #tpu.memory_space<vmem>>, vector<4x32xf32>
    %cst_10 = arith.constant dense<0.000000e+00> : vector<64x32xf32>
    %10 = tpu.matmul %0, %9, %cst_10 {dimension_numbers = #tpu.dot_dimension_numbers<[1], [0], [0], [1], [0, 0, 1, 1], [], []>} : vector<64x4xf32>, vector<4x32xf32>, vector<64x32xf32> -> vector<64x32xf32>
    %11 = vector.shape_cast %10 : vector<64x32xf32> to vector<8x8x32xf32>
    %c0_11 = arith.constant 0 : index
    %c0_12 = arith.constant 0 : index
    %12 = vector.load %arg2[%c0_11, %c0_12] : memref<8x32xf32, #tpu.memory_space<vmem>>, vector<8x32xf32>
    %13 = vector.shape_cast %12 : vector<8x32xf32> to vector<1x8x32xf32>
    %14 = vector.broadcast %13 : vector<1x8x32xf32> to vector<8x8x32xf32>
    %15 = arith.addf %11, %14 : vector<8x8x32xf32>
    %c0_13 = arith.constant 0 : index
    %c0_14 = arith.constant 0 : index
    %c0_15 = arith.constant 0 : index
    %16 = vector.load %arg15[%c0_13, %c0_14, %c0_15] : memref<8x8x32xf32, #tpu.memory_space<vmem>>, vector<8x8x32xf32>
    tpu.vector_store %arg15[%c0_13, %c0_14, %c0_15], %15 {strides = array<i32>} : memref<8x8x32xf32, #tpu.memory_space<vmem>>, vector<8x8x32xf32>,
    %c0_16 = arith.constant 0 : index
    %c0_17 = arith.constant 0 : index
    %17 = vector.load %arg6[%c0_16, %c0_17] : memref<4x32xf32, #tpu.memory_space<vmem>>, vector<4x32xf32>
    %cst_18 = arith.constant dense<0.000000e+00> : vector<64x32xf32>
    %18 = tpu.matmul %0, %17, %cst_18 {dimension_numbers = #tpu.dot_dimension_numbers<[1], [0], [0], [1], [0, 0, 1, 1], [], []>} : vector<64x4xf32>, vector<4x32xf32>, vector<64x32xf32> -> vector<64x32xf32>
    %19 = vector.shape_cast %18 : vector<64x32xf32> to vector<8x8x32xf32>
    %c0_19 = arith.constant 0 : index
    %c0_20 = arith.constant 0 : index
    %20 = vector.load %arg3[%c0_19, %c0_20] : memref<8x32xf32, #tpu.memory_space<vmem>>, vector<8x32xf32>
    %21 = vector.shape_cast %20 : vector<8x32xf32> to vector<1x8x32xf32>
    %22 = vector.broadcast %21 : vector<1x8x32xf32> to vector<8x8x32xf32>
    %23 = arith.addf %19, %22 : vector<8x8x32xf32>
    %c0_21 = arith.constant 0 : index
    %c0_22 = arith.constant 0 : index
    %c0_23 = arith.constant 0 : index
    %24 = vector.load %arg16[%c0_21, %c0_22, %c0_23] : memref<8x8x32xf32, #tpu.memory_space<vmem>>, vector<8x8x32xf32>
    tpu.vector_store %arg16[%c0_21, %c0_22, %c0_23], %23 {strides = array<i32>} : memref<8x8x32xf32, #tpu.memory_space<vmem>>, vector<8x8x32xf32>,
    %c0_24 = arith.constant 0 : index
    %c0_25 = arith.constant 0 : index
    %25 = vector.load %arg7[%c0_24, %c0_25] : memref<32x32xf32, #tpu.memory_space<vmem>>, vector<32x32xf32>
    %c0_26 = arith.constant 0 : index
    %c0_27 = arith.constant 0 : index
    %26 = vector.load %arg8[%c0_26, %c0_27] : memref<32x32xf32, #tpu.memory_space<vmem>>, vector<32x32xf32>
    %c0_28 = arith.constant 0 : index
    %c0_29 = arith.constant 0 : index
    %27 = vector.load %arg9[%c0_28, %c0_29] : memref<32x32xf32, #tpu.memory_space<vmem>>, vector<32x32xf32>
    %c0_30 = arith.constant 0 : index
    %c0_31 = arith.constant 0 : index
    %28 = vector.load %arg10[%c0_30, %c0_31] : memref<1x32xf32, #tpu.memory_space<vmem>>, vector<1x32xf32>
    %cst_32 = arith.constant 0.000000e+00 : f32
    %29 = vector.broadcast %cst_32 : f32 to vector<8x32xf32>
    %c0_i32 = arith.constant 0 : i32
    %cst_33 = arith.constant dense<0.000000e+00> : vector<8x32xf32>
    %30 = tpu.matmul %29, %25, %cst_33 {dimension_numbers = #tpu.dot_dimension_numbers<[1], [0], [0], [1], [0, 0, 1, 1], [], []>} : vector<8x32xf32>, vector<32x32xf32>, vector<8x32xf32> -> vector<8x32xf32>
    %cst_34 = arith.constant dense<0.000000e+00> : vector<8x32xf32>
    %31 = tpu.matmul %29, %26, %cst_34 {dimension_numbers = #tpu.dot_dimension_numbers<[1], [0], [0], [1], [0, 0, 1, 1], [], []>} : vector<8x32xf32>, vector<32x32xf32>, vector<8x32xf32> -> vector<8x32xf32>
    %cst_35 = arith.constant dense<0.000000e+00> : vector<8x32xf32>
    %32 = tpu.matmul %29, %27, %cst_35 {dimension_numbers = #tpu.dot_dimension_numbers<[1], [0], [0], [1], [0, 0, 1, 1], [], []>} : vector<8x32xf32>, vector<32x32xf32>, vector<8x32xf32> -> vector<8x32xf32>
    %33 = vector.broadcast %28 : vector<1x32xf32> to vector<8x32xf32>
    %34 = arith.addf %32, %33 : vector<8x32xf32>
    %35 = arith.index_cast %c0_i32 : i32 to index
    %c0_36 = arith.constant 0 : index
    %c0_37 = arith.constant 0 : index
    %36 = vector.load %arg14[%35, %c0_36, %c0_37] : memref<8x8x32xf32, #tpu.memory_space<vmem>>, vector<1x8x32xf32>
    %37 = vector.shape_cast %36 : vector<1x8x32xf32> to vector<8x32xf32>
    %38 = arith.addf %37, %30 : vector<8x32xf32>
    %39 = arith.negf %38 : vector<8x32xf32>
    %40 = math.exp %39 : vector<8x32xf32>
    %cst_38 = arith.constant 1.000000e+00 : f32
    %41 = vector.broadcast %cst_38 : f32 to vector<8x32xf32>
    %42 = arith.addf %41, %40 : vector<8x32xf32>
    %43 = arith.divf %41, %42 : vector<8x32xf32>
    %44 = arith.index_cast %c0_i32 : i32 to index
    %c0_39 = arith.constant 0 : index
    %c0_40 = arith.constant 0 : index
    %45 = vector.load %arg15[%44, %c0_39, %c0_40] : memref<8x8x32xf32, #tpu.memory_space<vmem>>, vector<1x8x32xf32>
    %46 = vector.shape_cast %45 : vector<1x8x32xf32> to vector<8x32xf32>
    %47 = arith.addf %46, %31 : vector<8x32xf32>
    %48 = arith.negf %47 : vector<8x32xf32>
    %49 = math.exp %48 : vector<8x32xf32>
    %cst_41 = arith.constant 1.000000e+00 : f32
    %50 = vector.broadcast %cst_41 : f32 to vector<8x32xf32>
    %51 = arith.addf %50, %49 : vector<8x32xf32>
    %52 = arith.divf %50, %51 : vector<8x32xf32>
    %53 = arith.index_cast %c0_i32 : i32 to index
    %c0_42 = arith.constant 0 : index
    %c0_43 = arith.constant 0 : index
    %54 = vector.load %arg16[%53, %c0_42, %c0_43] : memref<8x8x32xf32, #tpu.memory_space<vmem>>, vector<1x8x32xf32>
    %55 = vector.shape_cast %54 : vector<1x8x32xf32> to vector<8x32xf32>
    %56 = arith.mulf %43, %34 : vector<8x32xf32>
    %57 = arith.addf %55, %56 : vector<8x32xf32>
    %58 = math.tanh %57 : vector<8x32xf32>
    %cst_44 = arith.constant 1.000000e+00 : f32
    %59 = vector.broadcast %cst_44 : f32 to vector<8x32xf32>
    %60 = arith.subf %59, %52 : vector<8x32xf32>
    %61 = arith.mulf %60, %58 : vector<8x32xf32>
    %62 = arith.mulf %52, %29 : vector<8x32xf32>
    %63 = arith.addf %61, %62 : vector<8x32xf32>
    %64 = arith.index_cast %c0_i32 : i32 to index
    %c0_45 = arith.constant 0 : index
    %c0_46 = arith.constant 0 : index
    %65 = vector.load %arg17[%64, %c0_45, %c0_46] : memref<8x8x32xf32, #tpu.memory_space<vmem>>, vector<1x8x32xf32>
    %66 = vector.shape_cast %65 : vector<1x8x32xf32> to vector<8x32xf32>
    %67 = vector.shape_cast %63 : vector<8x32xf32> to vector<1x8x32xf32>
    tpu.vector_store %arg17[%64, %c0_45, %c0_46], %67 {strides = array<i32>} : memref<8x8x32xf32, #tpu.memory_space<vmem>>, vector<1x8x32xf32>,
    %c1_i32 = arith.constant 1 : i32
    %cst_47 = arith.constant dense<0.000000e+00> : vector<8x32xf32>
    %68 = tpu.matmul %63, %25, %cst_47 {dimension_numbers = #tpu.dot_dimension_numbers<[1], [0], [0], [1], [0, 0, 1, 1], [], []>} : vector<8x32xf32>, vector<32x32xf32>, vector<8x32xf32> -> vector<8x32xf32>
    %cst_48 = arith.constant dense<0.000000e+00> : vector<8x32xf32>
    %69 = tpu.matmul %63, %26, %cst_48 {dimension_numbers = #tpu.dot_dimension_numbers<[1], [0], [0], [1], [0, 0, 1, 1], [], []>} : vector<8x32xf32>, vector<32x32xf32>, vector<8x32xf32> -> vector<8x32xf32>
    %cst_49 = arith.constant dense<0.000000e+00> : vector<8x32xf32>
    %70 = tpu.matmul %63, %27, %cst_49 {dimension_numbers = #tpu.dot_dimension_numbers<[1], [0], [0], [1], [0, 0, 1, 1], [], []>} : vector<8x32xf32>, vector<32x32xf32>, vector<8x32xf32> -> vector<8x32xf32>
    %71 = vector.broadcast %28 : vector<1x32xf32> to vector<8x32xf32>
    %72 = arith.addf %70, %71 : vector<8x32xf32>
    %73 = arith.index_cast %c1_i32 : i32 to index
    %c0_50 = arith.constant 0 : index
    %c0_51 = arith.constant 0 : index
    %74 = vector.load %arg14[%73, %c0_50, %c0_51] : memref<8x8x32xf32, #tpu.memory_space<vmem>>, vector<1x8x32xf32>
    %75 = vector.shape_cast %74 : vector<1x8x32xf32> to vector<8x32xf32>
    %76 = arith.addf %75, %68 : vector<8x32xf32>
    %77 = arith.negf %76 : vector<8x32xf32>
    %78 = math.exp %77 : vector<8x32xf32>
    %cst_52 = arith.constant 1.000000e+00 : f32
    %79 = vector.broadcast %cst_52 : f32 to vector<8x32xf32>
    %80 = arith.addf %79, %78 : vector<8x32xf32>
    %81 = arith.divf %79, %80 : vector<8x32xf32>
    %82 = arith.index_cast %c1_i32 : i32 to index
    %c0_53 = arith.constant 0 : index
    %c0_54 = arith.constant 0 : index
    %83 = vector.load %arg15[%82, %c0_53, %c0_54] : memref<8x8x32xf32, #tpu.memory_space<vmem>>, vector<1x8x32xf32>
    %84 = vector.shape_cast %83 : vector<1x8x32xf32> to vector<8x32xf32>
    %85 = arith.addf %84, %69 : vector<8x32xf32>
    %86 = arith.negf %85 : vector<8x32xf32>
    %87 = math.exp %86 : vector<8x32xf32>
    %cst_55 = arith.constant 1.000000e+00 : f32
    %88 = vector.broadcast %cst_55 : f32 to vector<8x32xf32>
    %89 = arith.addf %88, %87 : vector<8x32xf32>
    %90 = arith.divf %88, %89 : vector<8x32xf32>
    %91 = arith.index_cast %c1_i32 : i32 to index
    %c0_56 = arith.constant 0 : index
    %c0_57 = arith.constant 0 : index
    %92 = vector.load %arg16[%91, %c0_56, %c0_57] : memref<8x8x32xf32, #tpu.memory_space<vmem>>, vector<1x8x32xf32>
    %93 = vector.shape_cast %92 : vector<1x8x32xf32> to vector<8x32xf32>
    %94 = arith.mulf %81, %72 : vector<8x32xf32>
    %95 = arith.addf %93, %94 : vector<8x32xf32>
    %96 = math.tanh %95 : vector<8x32xf32>
    %cst_58 = arith.constant 1.000000e+00 : f32
    %97 = vector.broadcast %cst_58 : f32 to vector<8x32xf32>
    %98 = arith.subf %97, %90 : vector<8x32xf32>
    %99 = arith.mulf %98, %96 : vector<8x32xf32>
    %100 = arith.mulf %90, %63 : vector<8x32xf32>
    %101 = arith.addf %99, %100 : vector<8x32xf32>
    %102 = arith.index_cast %c1_i32 : i32 to index
    %c0_59 = arith.constant 0 : index
    %c0_60 = arith.constant 0 : index
    %103 = vector.load %arg17[%102, %c0_59, %c0_60] : memref<8x8x32xf32, #tpu.memory_space<vmem>>, vector<1x8x32xf32>
    %104 = vector.shape_cast %103 : vector<1x8x32xf32> to vector<8x32xf32>
    %105 = vector.shape_cast %101 : vector<8x32xf32> to vector<1x8x32xf32>
    tpu.vector_store %arg17[%102, %c0_59, %c0_60], %105 {strides = array<i32>} : memref<8x8x32xf32, #tpu.memory_space<vmem>>, vector<1x8x32xf32>,
    %c2_i32 = arith.constant 2 : i32
    %cst_61 = arith.constant dense<0.000000e+00> : vector<8x32xf32>
    %106 = tpu.matmul %101, %25, %cst_61 {dimension_numbers = #tpu.dot_dimension_numbers<[1], [0], [0], [1], [0, 0, 1, 1], [], []>} : vector<8x32xf32>, vector<32x32xf32>, vector<8x32xf32> -> vector<8x32xf32>
    %cst_62 = arith.constant dense<0.000000e+00> : vector<8x32xf32>
    %107 = tpu.matmul %101, %26, %cst_62 {dimension_numbers = #tpu.dot_dimension_numbers<[1], [0], [0], [1], [0, 0, 1, 1], [], []>} : vector<8x32xf32>, vector<32x32xf32>, vector<8x32xf32> -> vector<8x32xf32>
    %cst_63 = arith.constant dense<0.000000e+00> : vector<8x32xf32>
    %108 = tpu.matmul %101, %27, %cst_63 {dimension_numbers = #tpu.dot_dimension_numbers<[1], [0], [0], [1], [0, 0, 1, 1], [], []>} : vector<8x32xf32>, vector<32x32xf32>, vector<8x32xf32> -> vector<8x32xf32>
    %109 = vector.broadcast %28 : vector<1x32xf32> to vector<8x32xf32>
    %110 = arith.addf %108, %109 : vector<8x32xf32>
    %111 = arith.index_cast %c2_i32 : i32 to index
    %c0_64 = arith.constant 0 : index
    %c0_65 = arith.constant 0 : index
    %112 = vector.load %arg14[%111, %c0_64, %c0_65] : memref<8x8x32xf32, #tpu.memory_space<vmem>>, vector<1x8x32xf32>
    %113 = vector.shape_cast %112 : vector<1x8x32xf32> to vector<8x32xf32>
    %114 = arith.addf %113, %106 : vector<8x32xf32>
    %115 = arith.negf %114 : vector<8x32xf32>
    %116 = math.exp %115 : vector<8x32xf32>
    %cst_66 = arith.constant 1.000000e+00 : f32
    %117 = vector.broadcast %cst_66 : f32 to vector<8x32xf32>
    %118 = arith.addf %117, %116 : vector<8x32xf32>
    %119 = arith.divf %117, %118 : vector<8x32xf32>
    %120 = arith.index_cast %c2_i32 : i32 to index
    %c0_67 = arith.constant 0 : index
    %c0_68 = arith.constant 0 : index
    %121 = vector.load %arg15[%120, %c0_67, %c0_68] : memref<8x8x32xf32, #tpu.memory_space<vmem>>, vector<1x8x32xf32>
    %122 = vector.shape_cast %121 : vector<1x8x32xf32> to vector<8x32xf32>
    %123 = arith.addf %122, %107 : vector<8x32xf32>
    %124 = arith.negf %123 : vector<8x32xf32>
    %125 = math.exp %124 : vector<8x32xf32>
    %cst_69 = arith.constant 1.000000e+00 : f32
    %126 = vector.broadcast %cst_69 : f32 to vector<8x32xf32>
    %127 = arith.addf %126, %125 : vector<8x32xf32>
    %128 = arith.divf %126, %127 : vector<8x32xf32>
    %129 = arith.index_cast %c2_i32 : i32 to index
    %c0_70 = arith.constant 0 : index
    %c0_71 = arith.constant 0 : index
    %130 = vector.load %arg16[%129, %c0_70, %c0_71] : memref<8x8x32xf32, #tpu.memory_space<vmem>>, vector<1x8x32xf32>
    %131 = vector.shape_cast %130 : vector<1x8x32xf32> to vector<8x32xf32>
    %132 = arith.mulf %119, %110 : vector<8x32xf32>
    %133 = arith.addf %131, %132 : vector<8x32xf32>
    %134 = math.tanh %133 : vector<8x32xf32>
    %cst_72 = arith.constant 1.000000e+00 : f32
    %135 = vector.broadcast %cst_72 : f32 to vector<8x32xf32>
    %136 = arith.subf %135, %128 : vector<8x32xf32>
    %137 = arith.mulf %136, %134 : vector<8x32xf32>
    %138 = arith.mulf %128, %101 : vector<8x32xf32>
    %139 = arith.addf %137, %138 : vector<8x32xf32>
    %140 = arith.index_cast %c2_i32 : i32 to index
    %c0_73 = arith.constant 0 : index
    %c0_74 = arith.constant 0 : index
    %141 = vector.load %arg17[%140, %c0_73, %c0_74] : memref<8x8x32xf32, #tpu.memory_space<vmem>>, vector<1x8x32xf32>
    %142 = vector.shape_cast %141 : vector<1x8x32xf32> to vector<8x32xf32>
    %143 = vector.shape_cast %139 : vector<8x32xf32> to vector<1x8x32xf32>
    tpu.vector_store %arg17[%140, %c0_73, %c0_74], %143 {strides = array<i32>} : memref<8x8x32xf32, #tpu.memory_space<vmem>>, vector<1x8x32xf32>,
    %c3_i32 = arith.constant 3 : i32
    %cst_75 = arith.constant dense<0.000000e+00> : vector<8x32xf32>
    %144 = tpu.matmul %139, %25, %cst_75 {dimension_numbers = #tpu.dot_dimension_numbers<[1], [0], [0], [1], [0, 0, 1, 1], [], []>} : vector<8x32xf32>, vector<32x32xf32>, vector<8x32xf32> -> vector<8x32xf32>
    %cst_76 = arith.constant dense<0.000000e+00> : vector<8x32xf32>
    %145 = tpu.matmul %139, %26, %cst_76 {dimension_numbers = #tpu.dot_dimension_numbers<[1], [0], [0], [1], [0, 0, 1, 1], [], []>} : vector<8x32xf32>, vector<32x32xf32>, vector<8x32xf32> -> vector<8x32xf32>
    %cst_77 = arith.constant dense<0.000000e+00> : vector<8x32xf32>
    %146 = tpu.matmul %139, %27, %cst_77 {dimension_numbers = #tpu.dot_dimension_numbers<[1], [0], [0], [1], [0, 0, 1, 1], [], []>} : vector<8x32xf32>, vector<32x32xf32>, vector<8x32xf32> -> vector<8x32xf32>
    %147 = vector.broadcast %28 : vector<1x32xf32> to vector<8x32xf32>
    %148 = arith.addf %146, %147 : vector<8x32xf32>
    %149 = arith.index_cast %c3_i32 : i32 to index
    %c0_78 = arith.constant 0 : index
    %c0_79 = arith.constant 0 : index
    %150 = vector.load %arg14[%149, %c0_78, %c0_79] : memref<8x8x32xf32, #tpu.memory_space<vmem>>, vector<1x8x32xf32>
    %151 = vector.shape_cast %150 : vector<1x8x32xf32> to vector<8x32xf32>
    %152 = arith.addf %151, %144 : vector<8x32xf32>
    %153 = arith.negf %152 : vector<8x32xf32>
    %154 = math.exp %153 : vector<8x32xf32>
    %cst_80 = arith.constant 1.000000e+00 : f32
    %155 = vector.broadcast %cst_80 : f32 to vector<8x32xf32>
    %156 = arith.addf %155, %154 : vector<8x32xf32>
    %157 = arith.divf %155, %156 : vector<8x32xf32>
    %158 = arith.index_cast %c3_i32 : i32 to index
    %c0_81 = arith.constant 0 : index
    %c0_82 = arith.constant 0 : index
    %159 = vector.load %arg15[%158, %c0_81, %c0_82] : memref<8x8x32xf32, #tpu.memory_space<vmem>>, vector<1x8x32xf32>
    %160 = vector.shape_cast %159 : vector<1x8x32xf32> to vector<8x32xf32>
    %161 = arith.addf %160, %145 : vector<8x32xf32>
    %162 = arith.negf %161 : vector<8x32xf32>
    %163 = math.exp %162 : vector<8x32xf32>
    %cst_83 = arith.constant 1.000000e+00 : f32
    %164 = vector.broadcast %cst_83 : f32 to vector<8x32xf32>
    %165 = arith.addf %164, %163 : vector<8x32xf32>
    %166 = arith.divf %164, %165 : vector<8x32xf32>
    %167 = arith.index_cast %c3_i32 : i32 to index
    %c0_84 = arith.constant 0 : index
    %c0_85 = arith.constant 0 : index
    %168 = vector.load %arg16[%167, %c0_84, %c0_85] : memref<8x8x32xf32, #tpu.memory_space<vmem>>, vector<1x8x32xf32>
    %169 = vector.shape_cast %168 : vector<1x8x32xf32> to vector<8x32xf32>
    %170 = arith.mulf %157, %148 : vector<8x32xf32>
    %171 = arith.addf %169, %170 : vector<8x32xf32>
    %172 = math.tanh %171 : vector<8x32xf32>
    %cst_86 = arith.constant 1.000000e+00 : f32
    %173 = vector.broadcast %cst_86 : f32 to vector<8x32xf32>
    %174 = arith.subf %173, %166 : vector<8x32xf32>
    %175 = arith.mulf %174, %172 : vector<8x32xf32>
    %176 = arith.mulf %166, %139 : vector<8x32xf32>
    %177 = arith.addf %175, %176 : vector<8x32xf32>
    %178 = arith.index_cast %c3_i32 : i32 to index
    %c0_87 = arith.constant 0 : index
    %c0_88 = arith.constant 0 : index
    %179 = vector.load %arg17[%178, %c0_87, %c0_88] : memref<8x8x32xf32, #tpu.memory_space<vmem>>, vector<1x8x32xf32>
    %180 = vector.shape_cast %179 : vector<1x8x32xf32> to vector<8x32xf32>
    %181 = vector.shape_cast %177 : vector<8x32xf32> to vector<1x8x32xf32>
    tpu.vector_store %arg17[%178, %c0_87, %c0_88], %181 {strides = array<i32>} : memref<8x8x32xf32, #tpu.memory_space<vmem>>, vector<1x8x32xf32>,
    %c4_i32 = arith.constant 4 : i32
    %cst_89 = arith.constant dense<0.000000e+00> : vector<8x32xf32>
    %182 = tpu.matmul %177, %25, %cst_89 {dimension_numbers = #tpu.dot_dimension_numbers<[1], [0], [0], [1], [0, 0, 1, 1], [], []>} : vector<8x32xf32>, vector<32x32xf32>, vector<8x32xf32> -> vector<8x32xf32>
    %cst_90 = arith.constant dense<0.000000e+00> : vector<8x32xf32>
    %183 = tpu.matmul %177, %26, %cst_90 {dimension_numbers = #tpu.dot_dimension_numbers<[1], [0], [0], [1], [0, 0, 1, 1], [], []>} : vector<8x32xf32>, vector<32x32xf32>, vector<8x32xf32> -> vector<8x32xf32>
    %cst_91 = arith.constant dense<0.000000e+00> : vector<8x32xf32>
    %184 = tpu.matmul %177, %27, %cst_91 {dimension_numbers = #tpu.dot_dimension_numbers<[1], [0], [0], [1], [0, 0, 1, 1], [], []>} : vector<8x32xf32>, vector<32x32xf32>, vector<8x32xf32> -> vector<8x32xf32>
    %185 = vector.broadcast %28 : vector<1x32xf32> to vector<8x32xf32>
    %186 = arith.addf %184, %185 : vector<8x32xf32>
    %187 = arith.index_cast %c4_i32 : i32 to index
    %c0_92 = arith.constant 0 : index
    %c0_93 = arith.constant 0 : index
    %188 = vector.load %arg14[%187, %c0_92, %c0_93] : memref<8x8x32xf32, #tpu.memory_space<vmem>>, vector<1x8x32xf32>
    %189 = vector.shape_cast %188 : vector<1x8x32xf32> to vector<8x32xf32>
    %190 = arith.addf %189, %182 : vector<8x32xf32>
    %191 = arith.negf %190 : vector<8x32xf32>
    %192 = math.exp %191 : vector<8x32xf32>
    %cst_94 = arith.constant 1.000000e+00 : f32
    %193 = vector.broadcast %cst_94 : f32 to vector<8x32xf32>
    %194 = arith.addf %193, %192 : vector<8x32xf32>
    %195 = arith.divf %193, %194 : vector<8x32xf32>
    %196 = arith.index_cast %c4_i32 : i32 to index
    %c0_95 = arith.constant 0 : index
    %c0_96 = arith.constant 0 : index
    %197 = vector.load %arg15[%196, %c0_95, %c0_96] : memref<8x8x32xf32, #tpu.memory_space<vmem>>, vector<1x8x32xf32>
    %198 = vector.shape_cast %197 : vector<1x8x32xf32> to vector<8x32xf32>
    %199 = arith.addf %198, %183 : vector<8x32xf32>
    %200 = arith.negf %199 : vector<8x32xf32>
    %201 = math.exp %200 : vector<8x32xf32>
    %cst_97 = arith.constant 1.000000e+00 : f32
    %202 = vector.broadcast %cst_97 : f32 to vector<8x32xf32>
    %203 = arith.addf %202, %201 : vector<8x32xf32>
    %204 = arith.divf %202, %203 : vector<8x32xf32>
    %205 = arith.index_cast %c4_i32 : i32 to index
    %c0_98 = arith.constant 0 : index
    %c0_99 = arith.constant 0 : index
    %206 = vector.load %arg16[%205, %c0_98, %c0_99] : memref<8x8x32xf32, #tpu.memory_space<vmem>>, vector<1x8x32xf32>
    %207 = vector.shape_cast %206 : vector<1x8x32xf32> to vector<8x32xf32>
    %208 = arith.mulf %195, %186 : vector<8x32xf32>
    %209 = arith.addf %207, %208 : vector<8x32xf32>
    %210 = math.tanh %209 : vector<8x32xf32>
    %cst_100 = arith.constant 1.000000e+00 : f32
    %211 = vector.broadcast %cst_100 : f32 to vector<8x32xf32>
    %212 = arith.subf %211, %204 : vector<8x32xf32>
    %213 = arith.mulf %212, %210 : vector<8x32xf32>
    %214 = arith.mulf %204, %177 : vector<8x32xf32>
    %215 = arith.addf %213, %214 : vector<8x32xf32>
    %216 = arith.index_cast %c4_i32 : i32 to index
    %c0_101 = arith.constant 0 : index
    %c0_102 = arith.constant 0 : index
    %217 = vector.load %arg17[%216, %c0_101, %c0_102] : memref<8x8x32xf32, #tpu.memory_space<vmem>>, vector<1x8x32xf32>
    %218 = vector.shape_cast %217 : vector<1x8x32xf32> to vector<8x32xf32>
    %219 = vector.shape_cast %215 : vector<8x32xf32> to vector<1x8x32xf32>
    tpu.vector_store %arg17[%216, %c0_101, %c0_102], %219 {strides = array<i32>} : memref<8x8x32xf32, #tpu.memory_space<vmem>>, vector<1x8x32xf32>,
    %c5_i32 = arith.constant 5 : i32
    %cst_103 = arith.constant dense<0.000000e+00> : vector<8x32xf32>
    %220 = tpu.matmul %215, %25, %cst_103 {dimension_numbers = #tpu.dot_dimension_numbers<[1], [0], [0], [1], [0, 0, 1, 1], [], []>} : vector<8x32xf32>, vector<32x32xf32>, vector<8x32xf32> -> vector<8x32xf32>
    %cst_104 = arith.constant dense<0.000000e+00> : vector<8x32xf32>
    %221 = tpu.matmul %215, %26, %cst_104 {dimension_numbers = #tpu.dot_dimension_numbers<[1], [0], [0], [1], [0, 0, 1, 1], [], []>} : vector<8x32xf32>, vector<32x32xf32>, vector<8x32xf32> -> vector<8x32xf32>
    %cst_105 = arith.constant dense<0.000000e+00> : vector<8x32xf32>
    %222 = tpu.matmul %215, %27, %cst_105 {dimension_numbers = #tpu.dot_dimension_numbers<[1], [0], [0], [1], [0, 0, 1, 1], [], []>} : vector<8x32xf32>, vector<32x32xf32>, vector<8x32xf32> -> vector<8x32xf32>
    %223 = vector.broadcast %28 : vector<1x32xf32> to vector<8x32xf32>
    %224 = arith.addf %222, %223 : vector<8x32xf32>
    %225 = arith.index_cast %c5_i32 : i32 to index
    %c0_106 = arith.constant 0 : index
    %c0_107 = arith.constant 0 : index
    %226 = vector.load %arg14[%225, %c0_106, %c0_107] : memref<8x8x32xf32, #tpu.memory_space<vmem>>, vector<1x8x32xf32>
    %227 = vector.shape_cast %226 : vector<1x8x32xf32> to vector<8x32xf32>
    %228 = arith.addf %227, %220 : vector<8x32xf32>
    %229 = arith.negf %228 : vector<8x32xf32>
    %230 = math.exp %229 : vector<8x32xf32>
    %cst_108 = arith.constant 1.000000e+00 : f32
    %231 = vector.broadcast %cst_108 : f32 to vector<8x32xf32>
    %232 = arith.addf %231, %230 : vector<8x32xf32>
    %233 = arith.divf %231, %232 : vector<8x32xf32>
    %234 = arith.index_cast %c5_i32 : i32 to index
    %c0_109 = arith.constant 0 : index
    %c0_110 = arith.constant 0 : index
    %235 = vector.load %arg15[%234, %c0_109, %c0_110] : memref<8x8x32xf32, #tpu.memory_space<vmem>>, vector<1x8x32xf32>
    %236 = vector.shape_cast %235 : vector<1x8x32xf32> to vector<8x32xf32>
    %237 = arith.addf %236, %221 : vector<8x32xf32>
    %238 = arith.negf %237 : vector<8x32xf32>
    %239 = math.exp %238 : vector<8x32xf32>
    %cst_111 = arith.constant 1.000000e+00 : f32
    %240 = vector.broadcast %cst_111 : f32 to vector<8x32xf32>
    %241 = arith.addf %240, %239 : vector<8x32xf32>
    %242 = arith.divf %240, %241 : vector<8x32xf32>
    %243 = arith.index_cast %c5_i32 : i32 to index
    %c0_112 = arith.constant 0 : index
    %c0_113 = arith.constant 0 : index
    %244 = vector.load %arg16[%243, %c0_112, %c0_113] : memref<8x8x32xf32, #tpu.memory_space<vmem>>, vector<1x8x32xf32>
    %245 = vector.shape_cast %244 : vector<1x8x32xf32> to vector<8x32xf32>
    %246 = arith.mulf %233, %224 : vector<8x32xf32>
    %247 = arith.addf %245, %246 : vector<8x32xf32>
    %248 = math.tanh %247 : vector<8x32xf32>
    %cst_114 = arith.constant 1.000000e+00 : f32
    %249 = vector.broadcast %cst_114 : f32 to vector<8x32xf32>
    %250 = arith.subf %249, %242 : vector<8x32xf32>
    %251 = arith.mulf %250, %248 : vector<8x32xf32>
    %252 = arith.mulf %242, %215 : vector<8x32xf32>
    %253 = arith.addf %251, %252 : vector<8x32xf32>
    %254 = arith.index_cast %c5_i32 : i32 to index
    %c0_115 = arith.constant 0 : index
    %c0_116 = arith.constant 0 : index
    %255 = vector.load %arg17[%254, %c0_115, %c0_116] : memref<8x8x32xf32, #tpu.memory_space<vmem>>, vector<1x8x32xf32>
    %256 = vector.shape_cast %255 : vector<1x8x32xf32> to vector<8x32xf32>
    %257 = vector.shape_cast %253 : vector<8x32xf32> to vector<1x8x32xf32>
    tpu.vector_store %arg17[%254, %c0_115, %c0_116], %257 {strides = array<i32>} : memref<8x8x32xf32, #tpu.memory_space<vmem>>, vector<1x8x32xf32>,
    %c6_i32 = arith.constant 6 : i32
    %cst_117 = arith.constant dense<0.000000e+00> : vector<8x32xf32>
    %258 = tpu.matmul %253, %25, %cst_117 {dimension_numbers = #tpu.dot_dimension_numbers<[1], [0], [0], [1], [0, 0, 1, 1], [], []>} : vector<8x32xf32>, vector<32x32xf32>, vector<8x32xf32> -> vector<8x32xf32>
    %cst_118 = arith.constant dense<0.000000e+00> : vector<8x32xf32>
    %259 = tpu.matmul %253, %26, %cst_118 {dimension_numbers = #tpu.dot_dimension_numbers<[1], [0], [0], [1], [0, 0, 1, 1], [], []>} : vector<8x32xf32>, vector<32x32xf32>, vector<8x32xf32> -> vector<8x32xf32>
    %cst_119 = arith.constant dense<0.000000e+00> : vector<8x32xf32>
    %260 = tpu.matmul %253, %27, %cst_119 {dimension_numbers = #tpu.dot_dimension_numbers<[1], [0], [0], [1], [0, 0, 1, 1], [], []>} : vector<8x32xf32>, vector<32x32xf32>, vector<8x32xf32> -> vector<8x32xf32>
    %261 = vector.broadcast %28 : vector<1x32xf32> to vector<8x32xf32>
    %262 = arith.addf %260, %261 : vector<8x32xf32>
    %263 = arith.index_cast %c6_i32 : i32 to index
    %c0_120 = arith.constant 0 : index
    %c0_121 = arith.constant 0 : index
    %264 = vector.load %arg14[%263, %c0_120, %c0_121] : memref<8x8x32xf32, #tpu.memory_space<vmem>>, vector<1x8x32xf32>
    %265 = vector.shape_cast %264 : vector<1x8x32xf32> to vector<8x32xf32>
    %266 = arith.addf %265, %258 : vector<8x32xf32>
    %267 = arith.negf %266 : vector<8x32xf32>
    %268 = math.exp %267 : vector<8x32xf32>
    %cst_122 = arith.constant 1.000000e+00 : f32
    %269 = vector.broadcast %cst_122 : f32 to vector<8x32xf32>
    %270 = arith.addf %269, %268 : vector<8x32xf32>
    %271 = arith.divf %269, %270 : vector<8x32xf32>
    %272 = arith.index_cast %c6_i32 : i32 to index
    %c0_123 = arith.constant 0 : index
    %c0_124 = arith.constant 0 : index
    %273 = vector.load %arg15[%272, %c0_123, %c0_124] : memref<8x8x32xf32, #tpu.memory_space<vmem>>, vector<1x8x32xf32>
    %274 = vector.shape_cast %273 : vector<1x8x32xf32> to vector<8x32xf32>
    %275 = arith.addf %274, %259 : vector<8x32xf32>
    %276 = arith.negf %275 : vector<8x32xf32>
    %277 = math.exp %276 : vector<8x32xf32>
    %cst_125 = arith.constant 1.000000e+00 : f32
    %278 = vector.broadcast %cst_125 : f32 to vector<8x32xf32>
    %279 = arith.addf %278, %277 : vector<8x32xf32>
    %280 = arith.divf %278, %279 : vector<8x32xf32>
    %281 = arith.index_cast %c6_i32 : i32 to index
    %c0_126 = arith.constant 0 : index
    %c0_127 = arith.constant 0 : index
    %282 = vector.load %arg16[%281, %c0_126, %c0_127] : memref<8x8x32xf32, #tpu.memory_space<vmem>>, vector<1x8x32xf32>
    %283 = vector.shape_cast %282 : vector<1x8x32xf32> to vector<8x32xf32>
    %284 = arith.mulf %271, %262 : vector<8x32xf32>
    %285 = arith.addf %283, %284 : vector<8x32xf32>
    %286 = math.tanh %285 : vector<8x32xf32>
    %cst_128 = arith.constant 1.000000e+00 : f32
    %287 = vector.broadcast %cst_128 : f32 to vector<8x32xf32>
    %288 = arith.subf %287, %280 : vector<8x32xf32>
    %289 = arith.mulf %288, %286 : vector<8x32xf32>
    %290 = arith.mulf %280, %253 : vector<8x32xf32>
    %291 = arith.addf %289, %290 : vector<8x32xf32>
    %292 = arith.index_cast %c6_i32 : i32 to index
    %c0_129 = arith.constant 0 : index
    %c0_130 = arith.constant 0 : index
    %293 = vector.load %arg17[%292, %c0_129, %c0_130] : memref<8x8x32xf32, #tpu.memory_space<vmem>>, vector<1x8x32xf32>
    %294 = vector.shape_cast %293 : vector<1x8x32xf32> to vector<8x32xf32>
    %295 = vector.shape_cast %291 : vector<8x32xf32> to vector<1x8x32xf32>
    tpu.vector_store %arg17[%292, %c0_129, %c0_130], %295 {strides = array<i32>} : memref<8x8x32xf32, #tpu.memory_space<vmem>>, vector<1x8x32xf32>,
    %c7_i32 = arith.constant 7 : i32
    %cst_131 = arith.constant dense<0.000000e+00> : vector<8x32xf32>
    %296 = tpu.matmul %291, %25, %cst_131 {dimension_numbers = #tpu.dot_dimension_numbers<[1], [0], [0], [1], [0, 0, 1, 1], [], []>} : vector<8x32xf32>, vector<32x32xf32>, vector<8x32xf32> -> vector<8x32xf32>
    %cst_132 = arith.constant dense<0.000000e+00> : vector<8x32xf32>
    %297 = tpu.matmul %291, %26, %cst_132 {dimension_numbers = #tpu.dot_dimension_numbers<[1], [0], [0], [1], [0, 0, 1, 1], [], []>} : vector<8x32xf32>, vector<32x32xf32>, vector<8x32xf32> -> vector<8x32xf32>
    %cst_133 = arith.constant dense<0.000000e+00> : vector<8x32xf32>
    %298 = tpu.matmul %291, %27, %cst_133 {dimension_numbers = #tpu.dot_dimension_numbers<[1], [0], [0], [1], [0, 0, 1, 1], [], []>} : vector<8x32xf32>, vector<32x32xf32>, vector<8x32xf32> -> vector<8x32xf32>
    %299 = vector.broadcast %28 : vector<1x32xf32> to vector<8x32xf32>
    %300 = arith.addf %298, %299 : vector<8x32xf32>
    %301 = arith.index_cast %c7_i32 : i32 to index
    %c0_134 = arith.constant 0 : index
    %c0_135 = arith.constant 0 : index
    %302 = vector.load %arg14[%301, %c0_134, %c0_135] : memref<8x8x32xf32, #tpu.memory_space<vmem>>, vector<1x8x32xf32>
    %303 = vector.shape_cast %302 : vector<1x8x32xf32> to vector<8x32xf32>
    %304 = arith.addf %303, %296 : vector<8x32xf32>
    %305 = arith.negf %304 : vector<8x32xf32>
    %306 = math.exp %305 : vector<8x32xf32>
    %cst_136 = arith.constant 1.000000e+00 : f32
    %307 = vector.broadcast %cst_136 : f32 to vector<8x32xf32>
    %308 = arith.addf %307, %306 : vector<8x32xf32>
    %309 = arith.divf %307, %308 : vector<8x32xf32>
    %310 = arith.index_cast %c7_i32 : i32 to index
    %c0_137 = arith.constant 0 : index
    %c0_138 = arith.constant 0 : index
    %311 = vector.load %arg15[%310, %c0_137, %c0_138] : memref<8x8x32xf32, #tpu.memory_space<vmem>>, vector<1x8x32xf32>
    %312 = vector.shape_cast %311 : vector<1x8x32xf32> to vector<8x32xf32>
    %313 = arith.addf %312, %297 : vector<8x32xf32>
    %314 = arith.negf %313 : vector<8x32xf32>
    %315 = math.exp %314 : vector<8x32xf32>
    %cst_139 = arith.constant 1.000000e+00 : f32
    %316 = vector.broadcast %cst_139 : f32 to vector<8x32xf32>
    %317 = arith.addf %316, %315 : vector<8x32xf32>
    %318 = arith.divf %316, %317 : vector<8x32xf32>
    %319 = arith.index_cast %c7_i32 : i32 to index
    %c0_140 = arith.constant 0 : index
    %c0_141 = arith.constant 0 : index
    %320 = vector.load %arg16[%319, %c0_140, %c0_141] : memref<8x8x32xf32, #tpu.memory_space<vmem>>, vector<1x8x32xf32>
    %321 = vector.shape_cast %320 : vector<1x8x32xf32> to vector<8x32xf32>
    %322 = arith.mulf %309, %300 : vector<8x32xf32>
    %323 = arith.addf %321, %322 : vector<8x32xf32>
    %324 = math.tanh %323 : vector<8x32xf32>
    %cst_142 = arith.constant 1.000000e+00 : f32
    %325 = vector.broadcast %cst_142 : f32 to vector<8x32xf32>
    %326 = arith.subf %325, %318 : vector<8x32xf32>
    %327 = arith.mulf %326, %324 : vector<8x32xf32>
    %328 = arith.mulf %318, %291 : vector<8x32xf32>
    %329 = arith.addf %327, %328 : vector<8x32xf32>
    %330 = arith.index_cast %c7_i32 : i32 to index
    %c0_143 = arith.constant 0 : index
    %c0_144 = arith.constant 0 : index
    %331 = vector.load %arg17[%330, %c0_143, %c0_144] : memref<8x8x32xf32, #tpu.memory_space<vmem>>, vector<1x8x32xf32>
    %332 = vector.shape_cast %331 : vector<1x8x32xf32> to vector<8x32xf32>
    %333 = vector.shape_cast %329 : vector<8x32xf32> to vector<1x8x32xf32>
    tpu.vector_store %arg17[%330, %c0_143, %c0_144], %333 {strides = array<i32>} : memref<8x8x32xf32, #tpu.memory_space<vmem>>, vector<1x8x32xf32>,
    %c8_i32 = arith.constant 8 : i32
    %c0_145 = arith.constant 0 : index
    %c0_146 = arith.constant 0 : index
    %c0_147 = arith.constant 0 : index
    %334 = vector.load %arg17[%c0_145, %c0_146, %c0_147] : memref<8x8x32xf32, #tpu.memory_space<vmem>>, vector<8x8x32xf32>
    %c0_148 = arith.constant 0 : index
    %c0_149 = arith.constant 0 : index
    %335 = vector.load %arg11[%c0_148, %c0_149] : memref<1x32xf32, #tpu.memory_space<vmem>>, vector<1x32xf32>
    %336 = vector.shape_cast %335 : vector<1x32xf32> to vector<1x1x32xf32>
    %337 = vector.broadcast %336 : vector<1x1x32xf32> to vector<8x8x32xf32>
    %338 = arith.mulf %334, %337 : vector<8x8x32xf32>
    %cst_150 = arith.constant dense<0.000000e+00> : vector<8x8xf32>
    %339 = vector.multi_reduction <add>, %338, %cst_150 [2] : vector<8x8x32xf32> to vector<8x8xf32>
    %c0_151 = arith.constant 0 : index
    %c0_152 = arith.constant 0 : index
    %340 = vector.load %arg12[%c0_151, %c0_152] : memref<1x1xf32, #tpu.memory_space<vmem>>, vector<1x1xf32>
    %341 = vector.broadcast %340 : vector<1x1xf32> to vector<8x8xf32>
    %342 = arith.addf %339, %341 : vector<8x8xf32>
    %343 = arith.negf %342 : vector<8x8xf32>
    %344 = math.exp %343 : vector<8x8xf32>
    %cst_153 = arith.constant 1.000000e+00 : f32
    %345 = vector.broadcast %cst_153 : f32 to vector<8x8xf32>
    %346 = arith.addf %345, %344 : vector<8x8xf32>
    %347 = arith.divf %345, %346 : vector<8x8xf32>
    %c0_154 = arith.constant 0 : index
    %c0_155 = arith.constant 0 : index
    %348 = vector.load %arg13[%c0_154, %c0_155] : memref<8x8xf32, #tpu.memory_space<vmem>>, vector<8x8xf32>
    tpu.vector_store %arg13[%c0_154, %c0_155], %347 {strides = array<i32>} : memref<8x8xf32, #tpu.memory_space<vmem>>, vector<8x8xf32>,
    return
  }
}

</mosaic_0001>

<bundles_post_ra>
// kernel: tpu_custom_call.1
= control target key start
LH: loop header
LB: loop body
LE: loop exit
PB: predicated region body
PF: predicated region fallthrough
CT: control target
= control target key end

     0   :  { %s4140_s0 = inlined_call_operand.vmem [shape: f32[64,4], index: 0, kind: input, shape index: {}]   ;;  %s4141_s1 = inlined_call_operand.hbm [shape: f32[8,32], index: 1, kind: input, shape index: {}]   ;;  %s4142_s2 = inlined_call_operand.hbm [shape: f32[8,32], index: 2, kind: input, shape index: {}]   ;;  %s4143_s3 = inlined_call_operand.hbm [shape: f32[8,32], index: 3, kind: input, shape index: {}]   ;;  %s4144_s4 = inlined_call_operand.hbm [shape: f32[4,32], index: 4, kind: input, shape index: {}]   ;;  %s4145_s5 = inlined_call_operand.hbm [shape: f32[4,32], index: 5, kind: input, shape index: {}]   ;;  %s4146_s6 = inlined_call_operand.hbm [shape: f32[4,32], index: 6, kind: input, shape index: {}]   ;;  %s4147_s7 = inlined_call_operand.vmem [shape: f32[32,32], index: 7, kind: input, shape index: {}]   ;;  %s4148_s8 = inlined_call_operand.vmem [shape: f32[32,32], index: 8, kind: input, shape index: {}]   ;;  %s4149_s9 = inlined_call_operand.vmem [shape: f32[32,32], index: 9, kind: input, shape index: {}]   ;;  %s4150_s10 = inlined_call_operand.vmem [shape: f32[1,32], index: 10, kind: input, shape index: {}]   ;;  %s4151_s11 = inlined_call_operand.vmem [shape: f32[1,32], index: 11, kind: input, shape index: {}]   ;;  %s4152_s12 = inlined_call_operand.<no memory space> [shape: f32[1,1], index: 12, kind: input, shape index: {}]   ;;  %s4153_s13 = inlined_call_operand.hbm [shape: f32[8,8], index: 13, kind: output, shape index: {}]  }
   0x1   :  { %v18_v0 = vstv %s4152_s12 }
   0x2   :  { %19 = vst [vmem:[#allocation6] sm:$0x1] %v18_v0 }
   0x3   :  { %20 = vsyncpa [#allocation8], 0 }
   0x4   :  { %21 = vsyncpa [#allocation11], 0 }
   0x5   :  { %22 = vsyncpa [#allocation14], 0 }
   0x6   :  { %23 = vsyncpa [#allocation17], 0 }
   0x7   :  { %24 = vsyncpa [#allocation9], 0  ;;  %s3631_s27 = smov [#allocation10]   ;;  %s3632_s29 = smov [#allocation13]  }
   0x8   :  { %s43_s28 = sshll.u32 %s3631_s27, 4  ;;  %s63_s30 = sshll.u32 %s3632_s29, 4  ;;  %s44_s28 = int_to_ptr.vmem [resolvable:$true] %s43_s28  ;;  %s64_s30 = int_to_ptr.vmem [resolvable:$true] %s63_s30 }
   0x9   :  { %s3467_s16 = scalar_lea.hbm %s4142_s2, 128 }
   0xa   :  { %p3468_p0 = scmp.ne.s32.totalorder %s4142_s2, %s3467_s16  ;;  %p3471_p1 = scmp.lt.u32.totalorder %s3467_s16, %s4142_s2 }
   0xc   :  { %p3473_p2 = pnand %p3471_p1, %p3468_p0 }
   0xe   :  { %3476 = shalt.err (!%p3473_p2)
}
   0xf   :  { %s3477_s20 = scalar_lea.vmem %s44_s28, 128  ;;  %p3482_p4 = scmp.lt.s32.totalorder %s44_s28, %s44_s28 }
  0x10   :  { %p3478_p3 = scmp.ne.s32.totalorder %s44_s28, %s3477_s20  ;;  %p3483_p5 = scmp.lt.s32.totalorder %s3477_s20, %s3477_s20 }
  0x12   :  { %p3484_p6 = por %p3483_p5, %p3482_p4 }
  0x14   :  { %p3485_p7 = pnand %p3484_p6, %p3478_p3 }
  0x16   :  { %3488 = shalt.err (!%p3485_p7)
}
  0x17   :  { %46 = dma.hbm_to_vmem [thread:$0]  %s4142_s2, 128, %s44_s28, [#allocation11]  }
  0x18   :  { %s3489_s25 = scalar_lea.hbm %s4144_s4, 64 }
  0x19   :  { %p3490_p8 = scmp.ne.s32.totalorder %s4144_s4, %s3489_s25  ;;  %p3493_p9 = scmp.lt.u32.totalorder %s3489_s25, %s4144_s4 }
  0x1b   :  { %p3495_p10 = pnand %p3493_p9, %p3490_p8 }
  0x1d   :  { %3498 = shalt.err (!%p3495_p10)
}
  0x1e   :  { %s3499_s15 = scalar_lea.vmem %s64_s30, 64  ;;  %p3504_p12 = scmp.lt.s32.totalorder %s64_s30, %s64_s30 }
  0x1f   :  { %p3500_p11 = scmp.ne.s32.totalorder %s64_s30, %s3499_s15  ;;  %p3505_p13 = scmp.lt.s32.totalorder %s3499_s15, %s3499_s15 }
  0x21   :  { %p3506_p0 = por %p3505_p13, %p3504_p12 }
  0x23   :  { %p3507_p1 = pnand %p3506_p0, %p3500_p11 }
  0x25   :  { %3510 = shalt.err (!%p3507_p1)
}
  0x26   :  { %66 = dma.hbm_to_vmem [thread:$0]  %s4144_s4, 64, %s64_s30, [#allocation14]  }
  0x27   :  { %s3633_s16 = smov [#allocation7]   ;;  %s3634_s18 = smov [#allocation12]  }
  0x28   :  { %s33_s17 = sshll.u32 %s3633_s16, 4  ;;  %s53_s12 = sshll.u32 %s3634_s18, 4  ;;  %s34_s17 = int_to_ptr.vmem [resolvable:$true] %s33_s17  ;;  %s54_s12 = int_to_ptr.vmem [resolvable:$true] %s53_s12 }
  0x29   :  { %s3511_s21 = scalar_lea.hbm %s4141_s1, 128 }
  0x2a   :  { %p3512_p2 = scmp.ne.s32.totalorder %s4141_s1, %s3511_s21  ;;  %p3515_p3 = scmp.lt.u32.totalorder %s3511_s21, %s4141_s1 }
  0x2c   :  { %p3517_p4 = pnand %p3515_p3, %p3512_p2 }
  0x2e   :  { %3520 = shalt.err (!%p3517_p4)
}
  0x2f   :  { %s3521_s4 = scalar_lea.vmem %s34_s17, 128  ;;  %p3526_p6 = scmp.lt.s32.totalorder %s34_s17, %s34_s17 }
  0x30   :  { %p3522_p5 = scmp.ne.s32.totalorder %s34_s17, %s3521_s4  ;;  %p3527_p7 = scmp.lt.s32.totalorder %s3521_s4, %s3521_s4 }
  0x32   :  { %p3528_p8 = por %p3527_p7, %p3526_p6 }
  0x34   :  { %p3529_p9 = pnand %p3528_p8, %p3522_p5 }
  0x36   :  { %3532 = shalt.err (!%p3529_p9)
}
  0x37   :  { %36 = dma.hbm_to_vmem [thread:$0]  %s4141_s1, 128, %s34_s17, [#allocation8]  }
  0x38   :  { %s3533_s14 = scalar_lea.hbm %s4143_s3, 128 }
  0x39   :  { %p3534_p10 = scmp.ne.s32.totalorder %s4143_s3, %s3533_s14  ;;  %p3537_p11 = scmp.lt.u32.totalorder %s3533_s14, %s4143_s3 }
  0x3b   :  { %p3539_p12 = pnand %p3537_p11, %p3534_p10 }
  0x3d   :  { %3542 = shalt.err (!%p3539_p12)
}
  0x3e   :  { %s3543_s18 = scalar_lea.vmem %s54_s12, 128  ;;  %p3548_p0 = scmp.lt.s32.totalorder %s54_s12, %s54_s12 }
  0x3f   :  { %p3544_p13 = scmp.ne.s32.totalorder %s54_s12, %s3543_s18  ;;  %p3549_p1 = scmp.lt.s32.totalorder %s3543_s18, %s3543_s18 }
  0x41   :  { %p3550_p2 = por %p3549_p1, %p3548_p0 }
  0x43   :  { %p3551_p3 = pnand %p3550_p2, %p3544_p13 }
  0x45   :  { %3554 = shalt.err (!%p3551_p3)
}
  0x46   :  { %56 = dma.hbm_to_vmem [thread:$0]  %s4143_s3, 128, %s54_s12, [#allocation11]  }
  0x47   :  { %s3635_s19 = smov [#allocation15]   ;;  %s3636_s21 = smov [#allocation16]  }
  0x48   :  { %s73_s20 = sshll.u32 %s3635_s19, 4  ;;  %s83_s22 = sshll.u32 %s3636_s21, 4  ;;  %s74_s20 = int_to_ptr.vmem [resolvable:$true] %s73_s20  ;;  %s84_s22 = int_to_ptr.vmem [resolvable:$true] %s83_s22 }
  0x49   :  { %s3555_s25 = scalar_lea.hbm %s4145_s5, 64 }
  0x4a   :  { %p3556_p4 = scmp.ne.s32.totalorder %s4145_s5, %s3555_s25  ;;  %p3559_p5 = scmp.lt.u32.totalorder %s3555_s25, %s4145_s5 }
  0x4c   :  { %p3561_p6 = pnand %p3559_p5, %p3556_p4 }
  0x4e   :  { %3564 = shalt.err (!%p3561_p6)
}
  0x4f   :  { %s3565_s3 = scalar_lea.vmem %s74_s20, 64  ;;  %p3570_p8 = scmp.lt.s32.totalorder %s74_s20, %s74_s20 }
  0x50   :  { %p3566_p7 = scmp.ne.s32.totalorder %s74_s20, %s3565_s3  ;;  %p3571_p9 = scmp.lt.s32.totalorder %s3565_s3, %s3565_s3 }
  0x52   :  { %p3572_p10 = por %p3571_p9, %p3570_p8 }
  0x54   :  { %p3573_p11 = pnand %p3572_p10, %p3566_p7 }
  0x56   :  { %3576 = shalt.err (!%p3573_p11)
}
  0x57   :  { %76 = dma.hbm_to_vmem [thread:$0]  %s4145_s5, 64, %s74_s20, [#allocation14]  }
  0x58   :  { %s3577_s2 = scalar_lea.hbm %s4146_s6, 64 }
  0x59   :  { %p3578_p12 = scmp.ne.s32.totalorder %s4146_s6, %s3577_s2  ;;  %p3581_p13 = scmp.lt.u32.totalorder %s3577_s2, %s4146_s6 }
  0x5b   :  { %p3583_p0 = pnand %p3581_p13, %p3578_p12 }
  0x5d   :  { %3586 = shalt.err (!%p3583_p0)
}
  0x5e   :  { %s3587_s17 = scalar_lea.vmem %s84_s22, 64  ;;  %p3592_p2 = scmp.lt.s32.totalorder %s84_s22, %s84_s22 }
  0x5f   :  { %p3588_p1 = scmp.ne.s32.totalorder %s84_s22, %s3587_s17  ;;  %p3593_p3 = scmp.lt.s32.totalorder %s3587_s17, %s3587_s17 }
  0x61   :  { %p3594_p4 = por %p3593_p3, %p3592_p2 }
  0x63   :  { %p3595_p5 = pnand %p3594_p4, %p3588_p1 }
  0x65   :  { %3598 = shalt.err (!%p3595_p5)
}
  0x66   :  { %86 = dma.hbm_to_vmem [thread:$0]  %s4146_s6, 64, %s84_s22, [#allocation17]  }
  0x67   :  { %3621 = dma.done.wait [#allocation8], 128  }
  0x68   :  { %3622 = vsyncadd [#allocation8], 4294967168 }
  0x69   :  { %3623 = dma.done.wait [#allocation11], 256  }
  0x6a   :  { %3624 = vsyncadd [#allocation11], 4294967040 }
  0x6b   :  { %3625 = dma.done.wait [#allocation14], 128  }
  0x6c   :  { %3626 = vsyncadd [#allocation14], 4294967168 }
  0x6d   :  { %3627 = dma.done.wait [#allocation17], 64  }
  0x6e   :  { %3628 = vsyncadd [#allocation17], 4294967232  ;;  %vm151_vm0 = vcmask 1043456   ;;  %vm126_vm1 = vcmask 31744   ;;  %v278_v1 = vld [vmem:[#allocation15] sm:$0xf] }
  0x6f   :  { %v117_v2 = vld [vmem:[%s4140_s0] sm:$0xff]  ;;  %v3793_v3 = vld [vmem:[%s4140_s0 + $0x8] sm:$0xff]  ;;  %2907 = vmatprep.subr.msk.mxu1 %vm151_vm0, %v278_v1  ;;  %v125_v6 = vld [vmem:[#allocation13] sm:$0xf]  ;;  %v3637_v9 = vmov 0.0|0.0   ;;  %vm3638_vm2 = vmmov 0  }
  0x70   :  { %2909 = vmatprep.mubr.msk.f32.mxu1 %vm126_vm1, %v117_v2  ;;  %v530_v4 = vld [vmem:[%s4147_s7] sm:$0xff]  ;;  %v531_v5 = vld [vmem:[%s4147_s7 + $0x8] sm:$0xff]  ;;  %2908 = vmatpush3.msk.msra.mxu1 %vm151_vm0, %v278_v1  ;;  %v119_v8 = vld [vmem:[%s4140_s0 + $0x10] sm:$0xff]  ;;  %v3639_v21 = vmov 0.0   ;;  %vm269_vm3 = vcmask 261120   ;;  %vm2636_vm4 = vcmask 1041409  }
  0x71   :  { %v3804_v7 = vpack.c.bf16 %v531_v5, %v530_v4  ;;  %2893 = vmatprep.subr.msk.mxu0 %vm151_vm0, %v125_v6  ;;  %2910 = vmatmul.mubr.msk.f32.vlgmr.msra.gmra.mrb[0].mxu1 %vm126_vm1, %v3793_v3  ;;  %v532_v10 = vld [vmem:[%s4147_s7 + $0x10] sm:$0xff]  ;;  %v533_v11 = vld [vmem:[%s4147_s7 + $0x18] sm:$0xff]  ;;  %v404_v14 = vld [vmem:[#allocation16] sm:$0xf]  ;;  %vm2638_vm5 = vcmask 1042434   ;;  %vm2640_vm6 = vcmask 1043459  }
  0x72   :  { %3199 = vmatprep.subr.bf16.mxu1 %v3637_v9  ;;  %2912 = vmatprep.mubr.msk.f32.mxu1 %vm126_vm1, %v119_v8  ;;  %v120_v12 = vld [vmem:[%s4140_s0 + $0x18] sm:$0xff]  ;;  %v3824_v13 = vpack.c.bf16 %v533_v11, %v532_v10  ;;  %v121_v15 = vld [vmem:[%s4140_s0 + $0x20] sm:$0xff]  ;;  %v122_v16 = vld [vmem:[%s4140_s0 + $0x28] sm:$0xff]  ;;  %vm2642_vm7 = vcmask 1044484   ;;  %vm2644_vm8 = vcmask 1045509   ;;  %vm2646_vm9 = vcmask 1046534  }
  0x73   :  { %3201 = vmatpush3.bf16.msra.mxu1 %v3804_v7  ;;  %2894 = vmatpush3.msk.msra.mxu0 %vm151_vm0, %v125_v6  ;;  %v123_v17 = vld [vmem:[%s4140_s0 + $0x30] sm:$0xff]  ;;  %v124_v18 = vld [vmem:[%s4140_s0 + $0x38] sm:$0xff]  ;;  %v534_v19 = vld [vmem:[%s4148_s8] sm:$0xff]  ;;  %vm2648_vm10 = vcmask 1047559   ;;  %vm2651_vm11 = vcmask 64512  }
  0x74   :  { %2895 = vmatprep.mubr.msk.f32.mxu0 %vm126_vm1, %v117_v2  ;;  %3202 = vmatprep.subr.bf16.mxu1 %v3637_v9  ;;  %v535_v20 = vld [vmem:[%s4148_s8 + $0x8] sm:$0xff]  ;;  %v538_v23 = vld [vmem:[%s4149_s9] sm:$0xff]  ;;  %v536_v25 = vld [vmem:[%s4148_s8 + $0x10] sm:$0xff] }
  0x75   :  { %2896 = vmatmul.mubr.msk.f32.vlgmr.msra.gmra.mrb[0].mxu0 %vm126_vm1, %v3793_v3  ;;  %2913 = vmatmul.mubr.msk.f32.gmra.mrb[2].mxu1 %vm126_vm1, %v120_v12  ;;  %v3866_v22 = vpack.c.bf16 %v535_v20, %v534_v19  ;;  %v539_v24 = vld [vmem:[%s4149_s9 + $0x8] sm:$0xff]  ;;  %v537_v26 = vld [vmem:[%s4148_s8 + $0x18] sm:$0xff]  ;;  %v540_v29 = vld [vmem:[%s4149_s9 + $0x10] sm:$0xff] }
  0x76   :  { %2921 = vmatprep.subr.msk.mxu0 %vm151_vm0, %v404_v14  ;;  %2915 = vmatprep.mubr.msk.f32.mxu1 %vm126_vm1, %v121_v15  ;;  %v3883_v27 = vpack.c.bf16 %v539_v24, %v538_v23  ;;  %v3886_v28 = vpack.c.bf16 %v537_v26, %v536_v25  ;;  %v541_v30 = vld [vmem:[%s4149_s9 + $0x18] sm:$0xff]  ;;  %v387_v32 = vld [vmem:[#allocation10] sm:$0xff]  ;;  %v260_v36 = vld [vmem:[#allocation7] sm:$0xff] }
  0x77   :  { %3204 = vmatpush3.bf16.msra.mxu1 %v3824_v13  ;;  %2922 = vmatpush3.msk.msra.mxu0 %vm151_vm0, %v404_v14  ;;  %v3903_v31 = vpack.c.bf16 %v541_v30, %v540_v29  ;;  %v513_v6 = vld [vmem:[#allocation12] sm:$0xff] }
  0x78   :  { %2898 = vmatprep.mubr.msk.f32.mxu0 %vm126_vm1, %v119_v8  ;;  %3205 = vmatprep.subr.bf16.mxu1 %v3637_v9 }
  0x79   :  { %2899 = vmatmul.mubr.msk.f32.gmra.mrb[2].mxu0 %vm126_vm1, %v120_v12  ;;  %2916 = vmatmul.mubr.msk.f32.gmra.mrb[4].mxu1 %vm126_vm1, %v122_v16 }
  0x7a   :  { %2901 = vmatprep.mubr.msk.f32.mxu0 %vm126_vm1, %v121_v15  ;;  %2918 = vmatprep.mubr.msk.f32.mxu1 %vm126_vm1, %v123_v17 }
  0x7b   :  { %3211 = vmatprep.subr.bf16.mxu0 %v3637_v9 }
  0x7d   :  { %2902 = vmatmul.mubr.msk.f32.gmra.mrb[4].mxu0 %vm126_vm1, %v122_v16  ;;  %2919 = vmatmul.mubr.msk.f32.gmra.mrb[6].mxu1 %vm126_vm1, %v124_v18 }
  0x7e   :  { %2904 = vmatprep.mubr.msk.f32.mxu0 %vm126_vm1, %v123_v17  ;;  %2943 = vmatprep.mubr.msk.f32.mxu1 %vm3638_vm2, %v3639_v21 }
  0x81   :  { %2905 = vmatmul.mubr.msk.f32.gmra.mrb[6].mxu0 %vm126_vm1, %v124_v18  ;;  %2944 = vmatmul.mubr.f32.vlgmr.msra.gmra.mrb[8].mxu1 %v3639_v21 }
  0x82   :  { %2923 = vmatprep.mubr.msk.f32.mxu0 %vm126_vm1, %v117_v2  ;;  %3207 = vmatpush3.bf16.msra.mxu1 %v3866_v22 }
  0x83   :  { %2954 = vmatprep.mubr.msk.f32.mxu1 %vm3638_vm2, %v3639_v21  ;;  %3208 = vmatprep.subr.bf16.mxu1 %v3637_v9 }
  0x85   :  { %2924 = vmatmul.mubr.msk.f32.vlgmr.msra.gmra.mrb[8].mxu0 %vm126_vm1, %v3793_v3 }
  0x86   :  { %3213 = vmatpush3.bf16.msra.mxu0 %v3883_v27  ;;  %2926 = vmatprep.mubr.msk.f32.mxu0 %vm126_vm1, %v119_v8 }
  0x87   :  { %3210 = vmatpush3.bf16.msra.mxu1 %v3886_v28  ;;  %3214 = vmatprep.subr.bf16.mxu0 %v3637_v9 }
  0x88   :  { %3217 = vmatprep.subr.bf16.mxu1 %v3637_v9 }
  0x89   :  { %2927 = vmatmul.mubr.msk.f32.gmra.mrb[10].mxu0 %vm126_vm1, %v120_v12 }
  0x8a   :  { %2955 = vmatmul.mubr.f32.vlgmr.msra.gmra.mrb[10].mxu1 %v3639_v21  ;;  %2929 = vmatprep.mubr.msk.f32.mxu0 %vm126_vm1, %v121_v15 }
  0x8b   :  { %3216 = vmatpush3.bf16.msra.mxu0 %v3903_v31  ;;  %3219 = vmatpush3.bf16.msra.mxu1 %v3804_v7 }
  0x8c   :  { %3223 = vmatprep.subr.bf16.mxu0 %v3637_v9  ;;  %3220 = vmatprep.subr.bf16.mxu1 %v3637_v9 }
  0x8d   :  { %2930 = vmatmul.mubr.msk.f32.gmra.mrb[12].mxu0 %vm126_vm1, %v122_v16  ;;  %2976 = vmatprep.mubr.msk.f32.mxu1 %vm3638_vm2, %v3639_v21 }
  0x8e   :  { %2932 = vmatprep.mubr.msk.f32.mxu0 %vm126_vm1, %v123_v17 }
  0x8f   :  { %3222 = vmatpush3.bf16.msra.mxu1 %v3824_v13 }
  0x90   :  { %3229 = vmatprep.subr.bf16.mxu1 %v3637_v9 }
  0x91   :  { %2933 = vmatmul.mubr.msk.f32.gmra.mrb[14].mxu0 %vm126_vm1, %v124_v18 }
  0x92   :  { %2965 = vmatprep.mubr.msk.f32.mxu0 %vm3638_vm2, %v3639_v21 }
  0x95   :  { %2966 = vmatmul.mubr.f32.vlgmr.msra.gmra.mrb[16].mxu0 %v3639_v21 }
  0x96   :  { %3225 = vmatpush3.bf16.msra.mxu0 %v3866_v22  ;;  %2987 = vmatprep.mubr.msk.f32.mxu0 %vm3638_vm2, %v3639_v21 }
  0x97   :  { %3226 = vmatprep.subr.bf16.mxu0 %v3637_v9 }
  0x9a   :  { %3228 = vmatpush3.bf16.msra.mxu0 %v3886_v28 }
  0x9b   :  { %3235 = vmatprep.subr.bf16.mxu0 %v3637_v9 }
 0x144   :  { %v2911_v33 = vpop.f32.mrb[0].mxu1 }
 0x145   :  { %v389_v34 = vadd.f32 %v2911_v33, %v387_v32  ;;  %v348_v35 = vpop.f32.mrb[1].mxu1 }
 0x146   :  { %v388_v37 = vadd.f32 %v387_v32, %v348_v35 }
 0x147   :  { %397 = vst.msk [vmem:[#allocation3 + $0x8] sm:$0xff] %vm269_vm3, %v389_v34 }
 0x148   :  { %v2897_v38 = vpop.f32.mrb[0].mxu0  ;;  %396 = vst.msk [vmem:[#allocation3] sm:$0xff] %vm269_vm3, %v388_v37  ;;  %v2914_v39 = vpop.f32.mrb[2].mxu1 }
 0x149   :  { %v262_v40 = vadd.f32 %v2897_v38, %v260_v36  ;;  %v221_v41 = vpop.f32.mrb[1].mxu0  ;;  %v391_v42 = vadd.f32 %v2914_v39, %v387_v32  ;;  %v358_v43 = vpop.f32.mrb[3].mxu1 }
 0x14a   :  { %v261_v44 = vadd.f32 %v260_v36, %v221_v41  ;;  %v390_v45 = vadd.f32 %v387_v32, %v358_v43  ;;  %v3956_v41 = vld [vmem:[%s4150_s10] ss:$0 sm:$0xff] }
 0x14b   :  { %271 = vst.msk [vmem:[#allocation2 + $0x8] sm:$0xff] %vm269_vm3, %v262_v40  ;;  %399 = vst.msk [vmem:[#allocation3 + $0x18] sm:$0xff] %vm269_vm3, %v391_v42 }
 0x14c   :  { %270 = vst.msk [vmem:[#allocation2] sm:$0xff] %vm269_vm3, %v261_v44  ;;  %v2900_v46 = vpop.f32.mrb[2].mxu0  ;;  %398 = vst.msk [vmem:[#allocation3 + $0x10] sm:$0xff] %vm269_vm3, %v390_v45  ;;  %v2917_v47 = vpop.f32.mrb[4].mxu1 }
 0x14d   :  { %v264_v48 = vadd.f32 %v2900_v46, %v260_v36  ;;  %v231_v49 = vpop.f32.mrb[3].mxu0  ;;  %v393_v50 = vadd.f32 %v2917_v47, %v387_v32  ;;  %v368_v51 = vpop.f32.mrb[5].mxu1 }
 0x14e   :  { %v263_v52 = vadd.f32 %v260_v36, %v231_v49  ;;  %v392_v53 = vadd.f32 %v387_v32, %v368_v51 }
 0x14f   :  { %273 = vst.msk [vmem:[#allocation2 + $0x18] sm:$0xff] %vm269_vm3, %v264_v48  ;;  %401 = vst.msk [vmem:[#allocation3 + $0x28] sm:$0xff] %vm269_vm3, %v393_v50  ;;  %v770_v17 = vld [vmem:[#allocation3] sm:$0xff] }
 0x150   :  { %272 = vst.msk [vmem:[#allocation2 + $0x10] sm:$0xff] %vm269_vm3, %v263_v52  ;;  %v2903_v54 = vpop.f32.mrb[4].mxu0  ;;  %400 = vst.msk [vmem:[#allocation3 + $0x20] sm:$0xff] %vm269_vm3, %v392_v53  ;;  %v2920_v55 = vpop.f32.mrb[6].mxu1 }
 0x151   :  { %v266_v56 = vadd.f32 %v2903_v54, %v260_v36  ;;  %v241_v57 = vpop.f32.mrb[5].mxu0  ;;  %v395_v58 = vadd.f32 %v2920_v55, %v387_v32  ;;  %v378_v59 = vpop.f32.mrb[7].mxu1  ;;  %v3974_v55 = vld [vmem:[%s4151_s11] ss:$0 sm:$0xff]  ;;  %s3641_s11 = smov [#allocation18]  }
 0x152   :  { %v265_v60 = vadd.f32 %v260_v36, %v241_v57  ;;  %v394_v61 = vadd.f32 %v387_v32, %v378_v59  ;;  %s2659_s15 = sshll.u32 %s3641_s11, 4  ;;  %s2660_s15 = int_to_ptr.vmem [resolvable:$true] %s2659_s15 }
 0x153   :  { %v762_v62 = vld [vmem:[#allocation2] sm:$0xff]  ;;  %275 = vst.msk [vmem:[#allocation2 + $0x28] sm:$0xff] %vm269_vm3, %v266_v56  ;;  %403 = vst.msk [vmem:[#allocation3 + $0x38] sm:$0xff] %vm269_vm3, %v395_v58  ;;  %s3599_s2 = scalar_lea.vmem %s2660_s15, 128  ;;  %p3604_p7 = scmp.lt.s32.totalorder %s2660_s15, %s2660_s15 }
 0x154   :  { %274 = vst.msk [vmem:[#allocation2 + $0x20] sm:$0xff] %vm269_vm3, %v265_v60  ;;  %v2906_v63 = vpop.f32.mrb[6].mxu0  ;;  %402 = vst.msk [vmem:[#allocation3 + $0x30] sm:$0xff] %vm269_vm3, %v394_v61  ;;  %v612_v0 = vpop.f32.mrb[8].mxu1  ;;  %v1001_v60 = vld [vmem:[#allocation2 + $0x8] sm:$0xff]  ;;  %p3600_p6 = scmp.ne.s32.totalorder %s2660_s15, %s3599_s2  ;;  %p3605_p8 = scmp.lt.s32.totalorder %s3599_s2, %s3599_s2 }
 0x155   :  { %v268_v1 = vadd.f32 %v2906_v63, %v260_v36  ;;  %v251_v2 = vpop.f32.mrb[7].mxu0  ;;  %v763_v3 = vadd.f32 %v762_v62, %v612_v0  ;;  %v2945_v4 = vpop.f32.mrb[9].mxu1 }
 0x156   :  { %v267_v5 = vadd.f32 %v260_v36, %v251_v2  ;;  %v1010_v2 = vld [vmem:[#allocation3 + $0x8] sm:$0xff]  ;;  %p3606_p9 = por %p3605_p8, %p3604_p7 }
 0x157   :  { %277 = vst.msk [vmem:[#allocation2 + $0x38] sm:$0xff] %vm269_vm3, %v268_v1  ;;  %v2699_v8 = vmul.f32 -1.442695, %v763_v3 }
 0x158   :  { %276 = vst.msk [vmem:[#allocation2 + $0x30] sm:$0xff] %vm269_vm3, %v267_v5  ;;  %v2925_v10 = vpop.f32.mrb[8].mxu0  ;;  %p3607_p10 = pnand %p3606_p9, %p3600_p6 }
 0x159   :  { %v515_v11 = vadd.f32 %v2925_v10, %v513_v6  ;;  %v474_v12 = vpop.f32.mrb[9].mxu0  ;;  %3355 = vpow2.f32 %v2699_v8 }
 0x15a   :  { %v514_v14 = vadd.f32 %v513_v6, %v474_v12 }
 0x15b   :  { %523 = vst.msk [vmem:[#allocation4 + $0x8] sm:$0xff] %vm269_vm3, %v515_v11 }
 0x15c   :  { %522 = vst.msk [vmem:[#allocation4] sm:$0xff] %vm269_vm3, %v514_v14  ;;  %v2928_v15 = vpop.f32.mrb[10].mxu0 }
 0x15d   :  { %v682_v16 = vpop.f32.mrb[10].mxu1  ;;  %v517_v18 = vadd.f32 %v2928_v15, %v513_v6  ;;  %v484_v19 = vpop.f32.mrb[11].mxu0 }
 0x15e   :  { %v771_v20 = vadd.f32 %v770_v17, %v682_v16  ;;  %v2956_v23 = vpop.f32.mrb[11].mxu1  ;;  %v516_v24 = vadd.f32 %v513_v6, %v484_v19 }
 0x15f   :  { %525 = vst.msk [vmem:[#allocation4 + $0x18] sm:$0xff] %vm269_vm3, %v517_v18 }
 0x160   :  { %v2700_v25 = vmul.f32 -1.442695, %v771_v20  ;;  %524 = vst.msk [vmem:[#allocation4 + $0x10] sm:$0xff] %vm269_vm3, %v516_v24  ;;  %v2931_v26 = vpop.f32.mrb[12].mxu0 }
 0x161   :  { %v519_v29 = vadd.f32 %v2931_v26, %v513_v6  ;;  %v494_v30 = vpop.f32.mrb[13].mxu0 }
 0x162   :  { %3357 = vpow2.f32 %v2700_v25  ;;  %v518_v32 = vadd.f32 %v513_v6, %v494_v30  ;;  %v1019_v17 = vld [vmem:[#allocation4 + $0x8] sm:$0xff] }
 0x163   :  { %527 = vst.msk [vmem:[#allocation4 + $0x28] sm:$0xff] %vm269_vm3, %v519_v29  ;;  %v3356_v33 = vpop.eup %3355  ;;  %v778_v47 = vld [vmem:[#allocation4] sm:$0xff] }
 0x164   :  { %526 = vst.msk [vmem:[#allocation4 + $0x20] sm:$0xff] %vm269_vm3, %v518_v32  ;;  %v2934_v34 = vpop.f32.mrb[14].mxu0  ;;  %v767_v35 = vadd.f32 1.0, %v3356_v33 }
 0x165   :  { %v521_v36 = vadd.f32 %v2934_v34, %v513_v6  ;;  %v504_v37 = vpop.f32.mrb[15].mxu0  ;;  %v1243_v34 = vld [vmem:[#allocation2 + $0x10] sm:$0xff] }
 0x166   :  { %v520_v38 = vadd.f32 %v513_v6, %v504_v37  ;;  %3359 = vrcp.f32 %v767_v35 }
 0x167   :  { %529 = vst.msk [vmem:[#allocation4 + $0x38] sm:$0xff] %vm269_vm3, %v521_v36 }
 0x168   :  { %528 = vst.msk [vmem:[#allocation4 + $0x30] sm:$0xff] %vm269_vm3, %v520_v38  ;;  %v758_v39 = vpop.f32.mrb[16].mxu0 }
 0x169   :  { %v2967_v40 = vpop.f32.mrb[17].mxu0  ;;  %v759_v44 = vadd.f32 %v3956_v41, %v758_v39 }
 0x16a   :  { %v1252_v40 = vld [vmem:[#allocation3 + $0x10] sm:$0xff] }
 0x16c   :  { %v3358_v42 = vpop.eup %3357 }
 0x16d   :  { %v775_v43 = vadd.f32 1.0, %v3358_v42 }
 0x16f   :  { %3361 = vrcp.f32 %v775_v43 }
 0x170   :  { %v3360_v45 = vpop.eup %3359 }
 0x171   :  { %v779_v46 = vmul.f32 %v3360_v45, %v759_v44 }
 0x173   :  { %v780_v48 = vadd.f32 %v779_v46, %v778_v47 }
 0x175   :  { %3363 = vtanh.f32 %v780_v48 }
 0x179   :  { %v3362_v49 = vpop.eup %3361 }
 0x17a   :  { %v782_v50 = vsub.f32 1.0, %v3362_v49  ;;  %v784_v53 = vmul.f32 0.0, %v3362_v49 }
 0x17f   :  { %v3364_v51 = vpop.eup %3363 }
 0x180   :  { %v783_v52 = vmul.f32 %v3364_v51, %v782_v50 }
 0x182   :  { %v785_v54 = vadd.f32 %v784_v53, %v783_v52  ;;  %v1261_v53 = vld [vmem:[#allocation4 + $0x10] sm:$0xff] }
 0x184   :  { %786 = vst.msk [vmem:[#allocation5] sm:$0xff] %vm269_vm3, %v785_v54  ;;  %2977 = vmatmul.mubr.msk.f32.vlgmr.msra.gmra.mrb[12].mxu1 %vm269_vm3, %v785_v54  ;;  %2988 = vmatmul.mubr.msk.f32.vlgmr.msra.gmra.mrb[18].mxu0 %vm269_vm3, %v785_v54 }
 0x185   :  { %3231 = vmatpush3.bf16.msra.mxu1 %v3883_v27  ;;  %2998 = vmatprep.mubr.msk.f32.mxu1 %vm3638_vm2, %v3639_v21 }
 0x186   :  { %3232 = vmatprep.subr.bf16.mxu1 %v3637_v9  ;;  %3237 = vmatpush3.bf16.msra.mxu0 %v3804_v7 }
 0x187   :  { %3238 = vmatprep.subr.bf16.mxu0 %v3637_v9  ;;  %3009 = vmatprep.mubr.msk.f32.mxu0 %vm3638_vm2, %v3639_v21 }
 0x189   :  { %3234 = vmatpush3.bf16.msra.mxu1 %v3903_v31 }
 0x18a   :  { %3241 = vmatprep.subr.bf16.mxu1 %v3637_v9  ;;  %3240 = vmatpush3.bf16.msra.mxu0 %v3824_v13 }
 0x18b   :  { %v2481_v56 = vld [vmem:[#allocation5] sm:$0xff]  ;;  %3247 = vmatprep.subr.bf16.mxu0 %v3637_v9 }
 0x18c   :  { %2999 = vmatmul.mubr.msk.f32.vlgmr.msra.gmra.mrb[14].mxu1 %vm269_vm3, %v785_v54  ;;  %v2496_v57 = vmul.f32 %v3974_v55, %v2481_v56 }
 0x18d   :  { %3243 = vmatpush3.bf16.msra.mxu1 %v3866_v22  ;;  %3020 = vmatprep.mubr.msk.f32.mxu1 %vm3638_vm2, %v3639_v21 }
 0x18e   :  { %v2504_v58 = vsel %vm269_vm3, %v2496_v57, 0.0  ;;  %3244 = vmatprep.subr.bf16.mxu1 %v3637_v9 }
 0x18f   :  { %2505 = vadd.xlane.f32.xlu0 %v2504_v58 }
 0x191   :  { %3246 = vmatpush3.bf16.msra.mxu1 %v3886_v28 }
 0x192   :  { %3253 = vmatprep.subr.bf16.mxu1 %v3637_v9 }
 0x257   :  { %v856_v59 = vpop.f32.mrb[12].mxu1  ;;  %v926_v61 = vpop.f32.mrb[18].mxu0 }
 0x258   :  { %v1002_v62 = vadd.f32 %v1001_v60, %v856_v59  ;;  %v2978_v63 = vpop.f32.mrb[13].mxu1  ;;  %v2989_v0 = vpop.f32.mrb[19].mxu0  ;;  %v1011_v3 = vadd.f32 %v1010_v2, %v926_v61  ;;  %v1485_v2 = vld [vmem:[#allocation2 + $0x18] sm:$0xff] }
 0x25a   :  { %v2704_v1 = vmul.f32 -1.442695, %v1002_v62  ;;  %v2705_v4 = vmul.f32 -1.442695, %v1011_v3 }
 0x25c   :  { %3365 = vpow2.f32 %v2704_v1 }
 0x25d   :  { %3367 = vpow2.f32 %v2705_v4 }
 0x25f   :  { %v996_v5 = vpop.f32.mrb[14].mxu1 }
 0x260   :  { %v3000_v6 = vpop.f32.mrb[15].mxu1  ;;  %v997_v14 = vadd.f32 %v3956_v41, %v996_v5 }
 0x266   :  { %v3366_v8 = vpop.eup %3365 }
 0x267   :  { %v1006_v10 = vadd.f32 1.0, %v3366_v8  ;;  %v3368_v11 = vpop.eup %3367 }
 0x268   :  { %v1015_v12 = vadd.f32 1.0, %v3368_v11 }
 0x269   :  { %3369 = vrcp.f32 %v1006_v10  ;;  %v1494_v10 = vld [vmem:[#allocation3 + $0x18] sm:$0xff] }
 0x26a   :  { %3371 = vrcp.f32 %v1015_v12 }
 0x273   :  { %v3370_v15 = vpop.eup %3369 }
 0x274   :  { %v1020_v16 = vmul.f32 %v3370_v15, %v997_v14  ;;  %v3372_v19 = vpop.eup %3371 }
 0x275   :  { %v1023_v20 = vsub.f32 1.0, %v3372_v19  ;;  %v1025_v25 = vmul.f32 %v3372_v19, %v785_v54 }
 0x276   :  { %v1021_v18 = vadd.f32 %v1020_v16, %v1019_v17 }
 0x278   :  { %3373 = vtanh.f32 %v1021_v18 }
 0x282   :  { %v3374_v23 = vpop.eup %3373 }
 0x283   :  { %v1024_v24 = vmul.f32 %v3374_v23, %v1023_v20 }
 0x285   :  { %v1026_v26 = vadd.f32 %v1025_v25, %v1024_v24  ;;  %v1503_v25 = vld [vmem:[#allocation4 + $0x18] sm:$0xff] }
 0x287   :  { %1028 = vst.msk [vmem:[#allocation5 + $0x8] sm:$0xff] %vm269_vm3, %v1026_v26  ;;  %3010 = vmatmul.mubr.msk.f32.vlgmr.msra.gmra.mrb[20].mxu0 %vm269_vm3, %v1026_v26  ;;  %3021 = vmatmul.mubr.msk.f32.vlgmr.msra.gmra.mrb[16].mxu1 %vm269_vm3, %v1026_v26 }
 0x288   :  { %3249 = vmatpush3.bf16.msra.mxu0 %v3883_v27  ;;  %3031 = vmatprep.mubr.msk.f32.mxu0 %vm3638_vm2, %v3639_v21 }
 0x289   :  { %3250 = vmatprep.subr.bf16.mxu0 %v3637_v9  ;;  %3255 = vmatpush3.bf16.msra.mxu1 %v3804_v7 }
 0x28a   :  { %3256 = vmatprep.subr.bf16.mxu1 %v3637_v9  ;;  %3042 = vmatprep.mubr.msk.f32.mxu1 %vm3638_vm2, %v3639_v21 }
 0x28c   :  { %3252 = vmatpush3.bf16.msra.mxu0 %v3903_v31 }
 0x28d   :  { %3259 = vmatprep.subr.bf16.mxu0 %v3637_v9  ;;  %3258 = vmatpush3.bf16.msra.mxu1 %v3824_v13 }
 0x28e   :  { %v2482_v29 = vld [vmem:[#allocation5 + $0x8] sm:$0xff]  ;;  %3265 = vmatprep.subr.bf16.mxu1 %v3637_v9 }
 0x28f   :  { %3032 = vmatmul.mubr.msk.f32.vlgmr.msra.gmra.mrb[22].mxu0 %vm269_vm3, %v1026_v26  ;;  %v2497_v30 = vmul.f32 %v3974_v55, %v2482_v29 }
 0x290   :  { %3261 = vmatpush3.bf16.msra.mxu0 %v3866_v22  ;;  %3053 = vmatprep.mubr.msk.f32.mxu0 %vm3638_vm2, %v3639_v21 }
 0x291   :  { %v2507_v32 = vsel %vm269_vm3, %v2497_v30, 0.0  ;;  %3262 = vmatprep.subr.bf16.mxu0 %v3637_v9 }
 0x292   :  { %2508 = vadd.xlane.f32.xlu0 %v2507_v32 }
 0x294   :  { %3264 = vmatpush3.bf16.msra.mxu0 %v3886_v28 }
 0x295   :  { %3271 = vmatprep.subr.bf16.mxu0 %v3637_v9 }
 0x35a   :  { %v1098_v33 = vpop.f32.mrb[20].mxu0  ;;  %v1168_v35 = vpop.f32.mrb[16].mxu1 }
 0x35b   :  { %v1244_v36 = vadd.f32 %v1243_v34, %v1098_v33  ;;  %v3011_v37 = vpop.f32.mrb[21].mxu0  ;;  %v3022_v38 = vpop.f32.mrb[17].mxu1  ;;  %v1253_v42 = vadd.f32 %v1252_v40, %v1168_v35  ;;  %v1727_v40 = vld [vmem:[#allocation2 + $0x20] sm:$0xff] }
 0x35d   :  { %v2709_v39 = vmul.f32 -1.442695, %v1244_v36  ;;  %v2710_v43 = vmul.f32 -1.442695, %v1253_v42 }
 0x35f   :  { %3375 = vpow2.f32 %v2709_v39 }
 0x360   :  { %3377 = vpow2.f32 %v2710_v43 }
 0x362   :  { %v1238_v44 = vpop.f32.mrb[22].mxu0 }
 0x363   :  { %v3033_v45 = vpop.f32.mrb[23].mxu0  ;;  %v1239_v50 = vadd.f32 %v3956_v41, %v1238_v44 }
 0x369   :  { %v3376_v46 = vpop.eup %3375 }
 0x36a   :  { %v1248_v47 = vadd.f32 1.0, %v3376_v46  ;;  %v3378_v48 = vpop.eup %3377 }
 0x36b   :  { %v1257_v49 = vadd.f32 1.0, %v3378_v48 }
 0x36c   :  { %3379 = vrcp.f32 %v1248_v47  ;;  %v1736_v47 = vld [vmem:[#allocation3 + $0x20] sm:$0xff] }
 0x36d   :  { %3381 = vrcp.f32 %v1257_v49 }
 0x376   :  { %v3380_v51 = vpop.eup %3379 }
 0x377   :  { %v1262_v52 = vmul.f32 %v3380_v51, %v1239_v50  ;;  %v3382_v56 = vpop.eup %3381 }
 0x378   :  { %v1265_v57 = vsub.f32 1.0, %v3382_v56  ;;  %v1267_v60 = vmul.f32 %v3382_v56, %v1026_v26 }
 0x379   :  { %v1263_v54 = vadd.f32 %v1262_v52, %v1261_v53 }
 0x37b   :  { %3383 = vtanh.f32 %v1263_v54 }
 0x385   :  { %v3384_v58 = vpop.eup %3383 }
 0x386   :  { %v1266_v59 = vmul.f32 %v3384_v58, %v1265_v57 }
 0x388   :  { %v1268_v61 = vadd.f32 %v1267_v60, %v1266_v59  ;;  %v1745_v60 = vld [vmem:[#allocation4 + $0x20] sm:$0xff] }
 0x38a   :  { %1270 = vst.msk [vmem:[#allocation5 + $0x10] sm:$0xff] %vm269_vm3, %v1268_v61  ;;  %3043 = vmatmul.mubr.msk.f32.vlgmr.msra.gmra.mrb[18].mxu1 %vm269_vm3, %v1268_v61  ;;  %3054 = vmatmul.mubr.msk.f32.vlgmr.msra.gmra.mrb[24].mxu0 %vm269_vm3, %v1268_v61 }
 0x38b   :  { %3267 = vmatpush3.bf16.msra.mxu1 %v3883_v27  ;;  %3064 = vmatprep.mubr.msk.f32.mxu1 %vm3638_vm2, %v3639_v21 }
 0x38c   :  { %3268 = vmatprep.subr.bf16.mxu1 %v3637_v9  ;;  %3273 = vmatpush3.bf16.msra.mxu0 %v3804_v7 }
 0x38d   :  { %3274 = vmatprep.subr.bf16.mxu0 %v3637_v9  ;;  %3075 = vmatprep.mubr.msk.f32.mxu0 %vm3638_vm2, %v3639_v21 }
 0x38f   :  { %3270 = vmatpush3.bf16.msra.mxu1 %v3903_v31 }
 0x390   :  { %3277 = vmatprep.subr.bf16.mxu1 %v3637_v9  ;;  %3276 = vmatpush3.bf16.msra.mxu0 %v3824_v13 }
 0x391   :  { %v2483_v62 = vld [vmem:[#allocation5 + $0x10] sm:$0xff]  ;;  %3283 = vmatprep.subr.bf16.mxu0 %v3637_v9 }
 0x392   :  { %3065 = vmatmul.mubr.msk.f32.vlgmr.msra.gmra.mrb[20].mxu1 %vm269_vm3, %v1268_v61  ;;  %v2498_v63 = vmul.f32 %v3974_v55, %v2483_v62 }
 0x393   :  { %3279 = vmatpush3.bf16.msra.mxu1 %v3866_v22  ;;  %3086 = vmatprep.mubr.msk.f32.mxu1 %vm3638_vm2, %v3639_v21 }
 0x394   :  { %v2510_v0 = vsel %vm269_vm3, %v2498_v63, 0.0  ;;  %3280 = vmatprep.subr.bf16.mxu1 %v3637_v9 }
 0x395   :  { %2511 = vadd.xlane.f32.xlu1 %v2510_v0 }
 0x397   :  { %3282 = vmatpush3.bf16.msra.mxu1 %v3886_v28 }
 0x398   :  { %3289 = vmatprep.subr.bf16.mxu1 %v3637_v9 }
 0x45d   :  { %v1340_v1 = vpop.f32.mrb[18].mxu1  ;;  %v1410_v3 = vpop.f32.mrb[24].mxu0 }
 0x45e   :  { %v1486_v4 = vadd.f32 %v1485_v2, %v1340_v1  ;;  %v3044_v5 = vpop.f32.mrb[19].mxu1  ;;  %v3055_v6 = vpop.f32.mrb[25].mxu0  ;;  %v1495_v11 = vadd.f32 %v1494_v10, %v1410_v3  ;;  %v1969_v10 = vld [vmem:[#allocation2 + $0x28] sm:$0xff] }
 0x460   :  { %v2714_v8 = vmul.f32 -1.442695, %v1486_v4  ;;  %v2715_v12 = vmul.f32 -1.442695, %v1495_v11 }
 0x462   :  { %3385 = vpow2.f32 %v2714_v8 }
 0x463   :  { %3387 = vpow2.f32 %v2715_v12 }
 0x465   :  { %v1480_v14 = vpop.f32.mrb[20].mxu1 }
 0x466   :  { %v3066_v15 = vpop.f32.mrb[21].mxu1  ;;  %v1481_v20 = vadd.f32 %v3956_v41, %v1480_v14 }
 0x46c   :  { %v3386_v16 = vpop.eup %3385 }
 0x46d   :  { %v1490_v17 = vadd.f32 1.0, %v3386_v16  ;;  %v3388_v18 = vpop.eup %3387 }
 0x46e   :  { %v1499_v19 = vadd.f32 1.0, %v3388_v18 }
 0x46f   :  { %3389 = vrcp.f32 %v1490_v17  ;;  %v1978_v17 = vld [vmem:[#allocation3 + $0x28] sm:$0xff] }
 0x470   :  { %3391 = vrcp.f32 %v1499_v19 }
 0x479   :  { %v3390_v23 = vpop.eup %3389 }
 0x47a   :  { %v1504_v24 = vmul.f32 %v3390_v23, %v1481_v20  ;;  %v3392_v29 = vpop.eup %3391 }
 0x47b   :  { %v1507_v30 = vsub.f32 1.0, %v3392_v29  ;;  %v1509_v34 = vmul.f32 %v3392_v29, %v1268_v61 }
 0x47c   :  { %v1505_v26 = vadd.f32 %v1504_v24, %v1503_v25 }
 0x47e   :  { %3393 = vtanh.f32 %v1505_v26 }
 0x488   :  { %v3394_v32 = vpop.eup %3393 }
 0x489   :  { %v1508_v33 = vmul.f32 %v3394_v32, %v1507_v30 }
 0x48b   :  { %v1510_v35 = vadd.f32 %v1509_v34, %v1508_v33  ;;  %v1987_v34 = vld [vmem:[#allocation4 + $0x28] sm:$0xff] }
 0x48d   :  { %1512 = vst.msk [vmem:[#allocation5 + $0x18] sm:$0xff] %vm269_vm3, %v1510_v35  ;;  %3076 = vmatmul.mubr.msk.f32.vlgmr.msra.gmra.mrb[26].mxu0 %vm269_vm3, %v1510_v35  ;;  %3087 = vmatmul.mubr.msk.f32.vlgmr.msra.gmra.mrb[22].mxu1 %vm269_vm3, %v1510_v35 }
 0x48e   :  { %3285 = vmatpush3.bf16.msra.mxu0 %v3883_v27  ;;  %3097 = vmatprep.mubr.msk.f32.mxu0 %vm3638_vm2, %v3639_v21 }
 0x48f   :  { %3286 = vmatprep.subr.bf16.mxu0 %v3637_v9  ;;  %3291 = vmatpush3.bf16.msra.mxu1 %v3804_v7 }
 0x490   :  { %3292 = vmatprep.subr.bf16.mxu1 %v3637_v9  ;;  %3108 = vmatprep.mubr.msk.f32.mxu1 %vm3638_vm2, %v3639_v21 }
 0x492   :  { %3288 = vmatpush3.bf16.msra.mxu0 %v3903_v31 }
 0x493   :  { %3295 = vmatprep.subr.bf16.mxu0 %v3637_v9  ;;  %3294 = vmatpush3.bf16.msra.mxu1 %v3824_v13 }
 0x494   :  { %v2484_v36 = vld [vmem:[#allocation5 + $0x18] sm:$0xff]  ;;  %3301 = vmatprep.subr.bf16.mxu1 %v3637_v9 }
 0x495   :  { %3098 = vmatmul.mubr.msk.f32.vlgmr.msra.gmra.mrb[28].mxu0 %vm269_vm3, %v1510_v35  ;;  %v2499_v37 = vmul.f32 %v3974_v55, %v2484_v36 }
 0x496   :  { %3297 = vmatpush3.bf16.msra.mxu0 %v3866_v22  ;;  %3119 = vmatprep.mubr.msk.f32.mxu0 %vm3638_vm2, %v3639_v21 }
 0x497   :  { %v2513_v38 = vsel %vm269_vm3, %v2499_v37, 0.0  ;;  %3298 = vmatprep.subr.bf16.mxu0 %v3637_v9 }
 0x498   :  { %2514 = vadd.xlane.f32.xlu1 %v2513_v38 }
 0x49a   :  { %3300 = vmatpush3.bf16.msra.mxu0 %v3886_v28 }
 0x49b   :  { %3307 = vmatprep.subr.bf16.mxu0 %v3637_v9 }
 0x560   :  { %v1582_v39 = vpop.f32.mrb[26].mxu0  ;;  %v1652_v42 = vpop.f32.mrb[22].mxu1 }
 0x561   :  { %v1728_v43 = vadd.f32 %v1727_v40, %v1582_v39  ;;  %v3077_v44 = vpop.f32.mrb[27].mxu0  ;;  %v3088_v45 = vpop.f32.mrb[23].mxu1  ;;  %v1737_v48 = vadd.f32 %v1736_v47, %v1652_v42 }
 0x563   :  { %v2719_v46 = vmul.f32 -1.442695, %v1728_v43  ;;  %v2720_v49 = vmul.f32 -1.442695, %v1737_v48 }
 0x565   :  { %3395 = vpow2.f32 %v2719_v46  ;;  %v2211_v46 = vld [vmem:[#allocation2 + $0x30] sm:$0xff] }
 0x566   :  { %3397 = vpow2.f32 %v2720_v49 }
 0x568   :  { %v1722_v50 = vpop.f32.mrb[28].mxu0 }
 0x569   :  { %v3099_v51 = vpop.f32.mrb[29].mxu0  ;;  %v1723_v57 = vadd.f32 %v3956_v41, %v1722_v50 }
 0x56f   :  { %v3396_v52 = vpop.eup %3395 }
 0x570   :  { %v1732_v53 = vadd.f32 1.0, %v3396_v52  ;;  %v3398_v54 = vpop.eup %3397 }
 0x571   :  { %v1741_v56 = vadd.f32 1.0, %v3398_v54 }
 0x572   :  { %3399 = vrcp.f32 %v1732_v53 }
 0x573   :  { %3401 = vrcp.f32 %v1741_v56 }
 0x57c   :  { %v3400_v58 = vpop.eup %3399 }
 0x57d   :  { %v1746_v59 = vmul.f32 %v3400_v58, %v1723_v57  ;;  %v3402_v62 = vpop.eup %3401 }
 0x57e   :  { %v1749_v63 = vsub.f32 1.0, %v3402_v62  ;;  %v1751_v2 = vmul.f32 %v3402_v62, %v1510_v35 }
 0x57f   :  { %v1747_v61 = vadd.f32 %v1746_v59, %v1745_v60 }
 0x581   :  { %3403 = vtanh.f32 %v1747_v61 }
 0x58b   :  { %v3404_v0 = vpop.eup %3403 }
 0x58c   :  { %v1750_v1 = vmul.f32 %v3404_v0, %v1749_v63  ;;  %v2229_v63 = vld [vmem:[#allocation4 + $0x30] sm:$0xff] }
 0x58e   :  { %v1752_v3 = vadd.f32 %v1751_v2, %v1750_v1 }
 0x590   :  { %1754 = vst.msk [vmem:[#allocation5 + $0x20] sm:$0xff] %vm269_vm3, %v1752_v3  ;;  %3109 = vmatmul.mubr.msk.f32.vlgmr.msra.gmra.mrb[24].mxu1 %vm269_vm3, %v1752_v3  ;;  %3120 = vmatmul.mubr.msk.f32.vlgmr.msra.gmra.mrb[30].mxu0 %vm269_vm3, %v1752_v3 }
 0x591   :  { %3303 = vmatpush3.bf16.msra.mxu1 %v3883_v27  ;;  %3130 = vmatprep.mubr.msk.f32.mxu1 %vm3638_vm2, %v3639_v21 }
 0x592   :  { %3304 = vmatprep.subr.bf16.mxu1 %v3637_v9  ;;  %3309 = vmatpush3.bf16.msra.mxu0 %v3804_v7 }
 0x593   :  { %3310 = vmatprep.subr.bf16.mxu0 %v3637_v9  ;;  %3141 = vmatprep.mubr.msk.f32.mxu0 %vm3638_vm2, %v3639_v21 }
 0x595   :  { %3306 = vmatpush3.bf16.msra.mxu1 %v3903_v31 }
 0x596   :  { %3313 = vmatprep.subr.bf16.mxu1 %v3637_v9  ;;  %3312 = vmatpush3.bf16.msra.mxu0 %v3824_v13 }
 0x597   :  { %v2485_v4 = vld [vmem:[#allocation5 + $0x20] sm:$0xff]  ;;  %3319 = vmatprep.subr.bf16.mxu0 %v3637_v9 }
 0x598   :  { %3131 = vmatmul.mubr.msk.f32.vlgmr.msra.gmra.mrb[26].mxu1 %vm269_vm3, %v1752_v3  ;;  %v2500_v5 = vmul.f32 %v3974_v55, %v2485_v4 }
 0x599   :  { %3315 = vmatpush3.bf16.msra.mxu1 %v3866_v22  ;;  %3152 = vmatprep.mubr.msk.f32.mxu1 %vm3638_vm2, %v3639_v21 }
 0x59a   :  { %v2516_v6 = vsel %vm269_vm3, %v2500_v5, 0.0  ;;  %3316 = vmatprep.subr.bf16.mxu1 %v3637_v9 }
 0x59b   :  { %2517 = vadd.xlane.f32.xlu0 %v2516_v6 }
 0x59d   :  { %3318 = vmatpush3.bf16.msra.mxu1 %v3886_v28 }
 0x59e   :  { %3325 = vmatprep.subr.bf16.mxu1 %v3637_v9 }
 0x663   :  { %v1824_v8 = vpop.f32.mrb[24].mxu1  ;;  %v1894_v11 = vpop.f32.mrb[30].mxu0 }
 0x664   :  { %v1970_v12 = vadd.f32 %v1969_v10, %v1824_v8  ;;  %v3110_v14 = vpop.f32.mrb[25].mxu1  ;;  %v3121_v15 = vpop.f32.mrb[31].mxu0  ;;  %v1979_v18 = vadd.f32 %v1978_v17, %v1894_v11 }
 0x665   :  { %v2453_v15 = vld [vmem:[#allocation2 + $0x38] sm:$0xff] }
 0x666   :  { %v2724_v16 = vmul.f32 -1.442695, %v1970_v12  ;;  %v2725_v19 = vmul.f32 -1.442695, %v1979_v18  ;;  %v2737_v12 = vld [vmem:[#allocation6] ss:$0 sm:$0xff] }
 0x668   :  { %3405 = vpow2.f32 %v2724_v16 }
 0x669   :  { %3407 = vpow2.f32 %v2725_v19 }
 0x66b   :  { %v1964_v20 = vpop.f32.mrb[26].mxu1 }
 0x66c   :  { %v3132_v23 = vpop.f32.mrb[27].mxu1  ;;  %v1965_v30 = vadd.f32 %v3956_v41, %v1964_v20 }
 0x672   :  { %v3406_v24 = vpop.eup %3405 }
 0x673   :  { %v1974_v25 = vadd.f32 1.0, %v3406_v24  ;;  %v3408_v26 = vpop.eup %3407 }
 0x674   :  { %v1983_v29 = vadd.f32 1.0, %v3408_v26 }
 0x675   :  { %3409 = vrcp.f32 %v1974_v25 }
 0x676   :  { %3411 = vrcp.f32 %v1983_v29 }
 0x67f   :  { %v3410_v32 = vpop.eup %3409 }
 0x680   :  { %v1988_v33 = vmul.f32 %v3410_v32, %v1965_v30  ;;  %v3412_v36 = vpop.eup %3411 }
 0x681   :  { %v1991_v37 = vsub.f32 1.0, %v3412_v36  ;;  %v1993_v40 = vmul.f32 %v3412_v36, %v1752_v3 }
 0x682   :  { %v1989_v35 = vadd.f32 %v1988_v33, %v1987_v34  ;;  %v2471_v34 = vld [vmem:[#allocation4 + $0x38] sm:$0xff] }
 0x684   :  { %3413 = vtanh.f32 %v1989_v35 }
 0x68e   :  { %v3414_v38 = vpop.eup %3413 }
 0x68f   :  { %v1992_v39 = vmul.f32 %v3414_v38, %v1991_v37 }
 0x691   :  { %v1994_v42 = vadd.f32 %v1993_v40, %v1992_v39 }
 0x693   :  { %1996 = vst.msk [vmem:[#allocation5 + $0x28] sm:$0xff] %vm269_vm3, %v1994_v42  ;;  %3142 = vmatmul.mubr.msk.f32.vlgmr.msra.gmra.mrb[32].mxu0 %vm269_vm3, %v1994_v42  ;;  %3153 = vmatmul.mubr.msk.f32.vlgmr.msra.gmra.mrb[28].mxu1 %vm269_vm3, %v1994_v42 }
 0x694   :  { %3321 = vmatpush3.bf16.msra.mxu0 %v3883_v27  ;;  %3163 = vmatprep.mubr.msk.f32.mxu0 %vm3638_vm2, %v3639_v21 }
 0x695   :  { %3322 = vmatprep.subr.bf16.mxu0 %v3637_v9  ;;  %3327 = vmatpush3.bf16.msra.mxu1 %v3804_v7 }
 0x696   :  { %3328 = vmatprep.subr.bf16.mxu1 %v3637_v9  ;;  %3174 = vmatprep.mubr.msk.f32.mxu1 %vm3638_vm2, %v3639_v21 }
 0x698   :  { %3324 = vmatpush3.bf16.msra.mxu0 %v3903_v31 }
 0x699   :  { %3331 = vmatprep.subr.bf16.mxu0 %v3637_v9  ;;  %3330 = vmatpush3.bf16.msra.mxu1 %v3824_v13  ;;  %v3640_v13 = vmov 0  }
 0x69a   :  { %v2486_v43 = vld [vmem:[#allocation5 + $0x28] sm:$0xff]  ;;  %3337 = vmatprep.subr.bf16.mxu1 %v3637_v9  ;;  %3354 = vset.pattern.permute.xlu0 %v3640_v13 }
 0x69b   :  { %3164 = vmatmul.mubr.msk.f32.vlgmr.msra.gmra.mrb[34].mxu0 %vm269_vm3, %v1994_v42  ;;  %v2501_v44 = vmul.f32 %v3974_v55, %v2486_v43 }
 0x69c   :  { %3333 = vmatpush3.bf16.msra.mxu0 %v3866_v22  ;;  %3185 = vmatprep.mubr.msk.f32.mxu0 %vm3638_vm2, %v3639_v21  ;;  %v2220_v22 = vld [vmem:[#allocation3 + $0x30] sm:$0xff] }
 0x69d   :  { %v2519_v7 = vsel %vm269_vm3, %v2501_v44, 0.0  ;;  %3334 = vmatprep.subr.bf16.mxu0 %v3637_v9 }
 0x69e   :  { %2520 = vadd.xlane.f32.xlu1 %v2519_v7 }
 0x6a0   :  { %3336 = vmatpush3.bf16.msra.mxu0 %v3886_v28 }
 0x766   :  { %v2066_v45 = vpop.f32.mrb[32].mxu0  ;;  %v2136_v47 = vpop.f32.mrb[28].mxu1 }
 0x767   :  { %v2212_v48 = vadd.f32 %v2211_v46, %v2066_v45  ;;  %v3143_v49 = vpop.f32.mrb[33].mxu0  ;;  %v3154_v50 = vpop.f32.mrb[29].mxu1  ;;  %v2221_v52 = vadd.f32 %v2220_v22, %v2136_v47 }
 0x768   :  { %v2512_v50 = vpop.xlane.xlu1 %2511 }
 0x769   :  { %v2729_v51 = vmul.f32 -1.442695, %v2212_v48  ;;  %v2730_v53 = vmul.f32 -1.442695, %v2221_v52 }
 0x76b   :  { %3415 = vpow2.f32 %v2729_v51 }
 0x76c   :  { %3417 = vpow2.f32 %v2730_v53  ;;  %v2515_v53 = vpop.xlane.xlu1 %2514 }
 0x76e   :  { %v2206_v54 = vpop.f32.mrb[34].mxu0 }
 0x76f   :  { %v3165_v56 = vpop.f32.mrb[35].mxu0  ;;  %v2207_v60 = vadd.f32 %v3956_v41, %v2206_v54 }
 0x775   :  { %v3416_v57 = vpop.eup %3415 }
 0x776   :  { %v2216_v58 = vadd.f32 1.0, %v3416_v57  ;;  %v3418_v28 = vpop.eup %3417 }
 0x777   :  { %v2225_v59 = vadd.f32 1.0, %v3418_v28 }
 0x778   :  { %3419 = vrcp.f32 %v2216_v58  ;;  %v2521_v58 = vpop.xlane.xlu1 %2520 }
 0x779   :  { %3421 = vrcp.f32 %v2225_v59 }
 0x782   :  { %v3420_v61 = vpop.eup %3419 }
 0x783   :  { %v2230_v62 = vmul.f32 %v3420_v61, %v2207_v60  ;;  %v3422_v1 = vpop.eup %3421 }
 0x784   :  { %v2233_v2 = vsub.f32 1.0, %v3422_v1  ;;  %v2235_v5 = vmul.f32 %v3422_v1, %v1994_v42 }
 0x785   :  { %v2231_v0 = vadd.f32 %v2230_v62, %v2229_v63 }
 0x787   :  { %3423 = vtanh.f32 %v2231_v0 }
 0x791   :  { %v3424_v3 = vpop.eup %3423 }
 0x792   :  { %v2234_v4 = vmul.f32 %v3424_v3, %v2233_v2 }
 0x794   :  { %v2236_v6 = vadd.f32 %v2235_v5, %v2234_v4 }
 0x796   :  { %2238 = vst.msk [vmem:[#allocation5 + $0x30] sm:$0xff] %vm269_vm3, %v2236_v6  ;;  %3175 = vmatmul.mubr.msk.f32.vlgmr.msra.gmra.mrb[30].mxu1 %vm269_vm3, %v2236_v6  ;;  %3186 = vmatmul.mubr.msk.f32.vlgmr.msra.gmra.mrb[36].mxu0 %vm269_vm3, %v2236_v6 }
 0x797   :  { %3339 = vmatpush3.bf16.msra.mxu1 %v3883_v27  ;;  %3196 = vmatprep.mubr.msk.f32.mxu1 %vm3638_vm2, %v3639_v21 }
 0x798   :  { %3340 = vmatprep.subr.bf16.mxu1 %v3637_v9  ;;  %v2462_v9 = vld [vmem:[#allocation3 + $0x38] sm:$0xff] }
 0x79b   :  { %3342 = vmatpush3.bf16.msra.mxu1 %v3903_v31 }
 0x79d   :  { %v2487_v8 = vld [vmem:[#allocation5 + $0x30] sm:$0xff] }
 0x79e   :  { %3197 = vmatmul.mubr.msk.f32.vlgmr.msra.gmra.mrb[32].mxu1 %vm269_vm3, %v2236_v6  ;;  %v2502_v10 = vmul.f32 %v3974_v55, %v2487_v8 }
 0x7a0   :  { %v2522_v11 = vsel %vm269_vm3, %v2502_v10, 0.0 }
 0x7a1   :  { %2523 = vadd.xlane.f32.xlu0 %v2522_v11 }
 0x7b7   :  { %2535 = vperm.xlu0 %3354, %v2737_v12  }
 0x869   :  { %v2308_v14 = vpop.f32.mrb[30].mxu1  ;;  %v2378_v27 = vpop.f32.mrb[36].mxu0 }
 0x86a   :  { %v2454_v16 = vadd.f32 %v2453_v15, %v2308_v14  ;;  %v3176_v17 = vpop.f32.mrb[31].mxu1  ;;  %v3187_v21 = vpop.f32.mrb[37].mxu0  ;;  %v2463_v19 = vadd.f32 %v2462_v9, %v2378_v27 }
 0x86c   :  { %v2734_v18 = vmul.f32 -1.442695, %v2454_v16  ;;  %v2735_v31 = vmul.f32 -1.442695, %v2463_v19 }
 0x86e   :  { %3425 = vpow2.f32 %v2734_v18 }
 0x86f   :  { %3427 = vpow2.f32 %v2735_v31 }
 0x871   :  { %v2448_v20 = vpop.f32.mrb[32].mxu1 }
 0x872   :  { %v3198_v23 = vpop.f32.mrb[33].mxu1  ;;  %v2449_v30 = vadd.f32 %v3956_v41, %v2448_v20  ;;  %v2506_v41 = vpop.xlane.xlu0 %2505 }
 0x876   :  { %v2509_v13 = vpop.xlane.xlu0 %2508 }
 0x878   :  { %v3426_v24 = vpop.eup %3425 }
 0x879   :  { %v2458_v25 = vadd.f32 1.0, %v3426_v24  ;;  %v3428_v26 = vpop.eup %3427 }
 0x87a   :  { %v2467_v29 = vadd.f32 1.0, %v3428_v26  ;;  %v2518_v45 = vpop.xlane.xlu0 %2517 }
 0x87b   :  { %3429 = vrcp.f32 %v2458_v25 }
 0x87c   :  { %3431 = vrcp.f32 %v2467_v29 }
 0x87e   :  { %v2524_v46 = vpop.xlane.xlu0 %2523 }
 0x882   :  { %v2536_v47 = vpop.permute.xlu0 %2535 }
 0x883   :  { %v2538_v48 = vadd.f32 %v2536_v47, %v2506_v41  ;;  %v2539_v49 = vadd.f32 %v2536_v47, %v2509_v13  ;;  %v2540_v51 = vadd.f32 %v2536_v47, %v2512_v50  ;;  %v2541_v56 = vadd.f32 %v2536_v47, %v2515_v53 }
 0x884   :  { %v2543_v28 = vadd.f32 %v2536_v47, %v2521_v58  ;;  %v2544_v59 = vadd.f32 %v2536_v47, %v2524_v46 }
 0x885   :  { %v3430_v32 = vpop.eup %3429  ;;  %v2738_v22 = vmul.f32 -1.442695, %v2538_v48  ;;  %v2739_v52 = vmul.f32 -1.442695, %v2539_v49  ;;  %v2740_v54 = vmul.f32 -1.442695, %v2540_v51 }
 0x886   :  { %v2472_v33 = vmul.f32 %v3430_v32, %v2449_v30  ;;  %v3432_v36 = vpop.eup %3431  ;;  %v2741_v57 = vmul.f32 -1.442695, %v2541_v56  ;;  %v2743_v63 = vmul.f32 -1.442695, %v2543_v28  ;;  %v2744_v0 = vmul.f32 -1.442695, %v2544_v59 }
 0x887   :  { %v2475_v37 = vsub.f32 1.0, %v3432_v36  ;;  %v2477_v39 = vmul.f32 %v3432_v36, %v2236_v6  ;;  %v2602_v6 = vlaneseq }
 0x888   :  { %v2473_v35 = vadd.f32 %v2472_v33, %v2471_v34 }
 0x889   :  { %v2603_v15 = vand.u32 127, %v2602_v6  ;;  %v2605_v27 = vshrl.u32 %v2602_v6, 7 }
 0x88a   :  { %3433 = vtanh.f32 %v2473_v35 }
 0x88b   :  { %3435 = vpow2.f32 %v2738_v22  ;;  %v2606_v9 = vsub.s32 %v2603_v15, %v2605_v27 }
 0x88c   :  { %3437 = vpow2.f32 %v2739_v52 }
 0x88d   :  { %3439 = vpow2.f32 %v2740_v54 }
 0x88e   :  { %3441 = vpow2.f32 %v2741_v57 }
 0x894   :  { %v3434_v38 = vpop.eup %3433 }
 0x895   :  { %v2476_v40 = vmul.f32 %v3434_v38, %v2475_v37  ;;  %v3436_v61 = vpop.eup %3435 }
 0x896   :  { %v3438_v62 = vpop.eup %3437  ;;  %v2570_v1 = vadd.f32 1.0, %v3436_v61 }
 0x897   :  { %v2478_v42 = vadd.f32 %v2477_v39, %v2476_v40  ;;  %v3440_v2 = vpop.eup %3439  ;;  %v2571_v3 = vadd.f32 1.0, %v3438_v62 }
 0x898   :  { %v2572_v4 = vadd.f32 1.0, %v3440_v2  ;;  %v3442_v5 = vpop.eup %3441 }
 0x899   :  { %2480 = vst.msk [vmem:[#allocation5 + $0x38] sm:$0xff] %vm269_vm3, %v2478_v42  ;;  %v2573_v12 = vadd.f32 1.0, %v3442_v5 }
 0x8a0   :  { %v2488_v43 = vld [vmem:[#allocation5 + $0x38] sm:$0xff] }
 0x8a1   :  { %v2503_v44 = vmul.f32 %v3974_v55, %v2488_v43  ;;  %v2542_v55 = vadd.f32 %v2536_v47, %v2518_v45 }
 0x8a3   :  { %v2525_v7 = vsel %vm269_vm3, %v2503_v44, 0.0  ;;  %v2742_v60 = vmul.f32 -1.442695, %v2542_v55 }
 0x8a4   :  { %2526 = vadd.xlane.f32.xlu1 %v2525_v7 }
 0x8a5   :  { %3443 = vpow2.f32 %v2742_v60 }
 0x8a6   :  { %3445 = vpow2.f32 %v2743_v63 }
 0x8a7   :  { %3447 = vpow2.f32 %v2744_v0 }
 0x8a8   :  { %3449 = vrcp.f32 %v2570_v1 }
 0x8a9   :  { %3451 = vrcp.f32 %v2571_v3 }
 0x8aa   :  { %3453 = vrcp.f32 %v2572_v4 }
 0x8af   :  { %v3444_v11 = vpop.eup %3443 }
 0x8b0   :  { %v3446_v16 = vpop.eup %3445  ;;  %v2574_v17 = vadd.f32 1.0, %v3444_v11 }
 0x8b1   :  { %v3448_v21 = vpop.eup %3447  ;;  %v2575_v31 = vadd.f32 1.0, %v3446_v16 }
 0x8b2   :  { %v3450_v18 = vpop.eup %3449  ;;  %v2576_v23 = vadd.f32 1.0, %v3448_v21 }
 0x8b3   :  { %v3452_v19 = vpop.eup %3451  ;;  %v2607_v24 = vrot.slane %v3450_v18, %v2606_v9 }
 0x8b4   :  { %v3454_v20 = vpop.eup %3453  ;;  %v2611_v25 = vrot.slane %v3452_v19, %v2606_v9 }
 0x8b5   :  { %v2615_v26 = vrot.slane %v3454_v20, %v2606_v9 }
 0x8b6   :  { %v2637_v30 = vsel %vm2636_vm4, %v2611_v25, %v2607_v24 }
 0x8b7   :  { %v2639_v34 = vsel %vm2638_vm5, %v2615_v26, %v2637_v30 }
 0x931   :  { %v2527_v8 = vpop.xlane.xlu1 %2526 }
 0x932   :  { %v2545_v10 = vadd.f32 %v2536_v47, %v2527_v8 }
 0x934   :  { %v2745_v14 = vmul.f32 -1.442695, %v2545_v10 }
 0x936   :  { %3455 = vpow2.f32 %v2745_v14 }
 0x937   :  { %3457 = vrcp.f32 %v2573_v12 }
 0x938   :  { %3459 = vrcp.f32 %v2574_v17 }
 0x939   :  { %3461 = vrcp.f32 %v2575_v31 }
 0x93a   :  { %3463 = vrcp.f32 %v2576_v23 }
 0x940   :  { %v3456_v29 = vpop.eup %3455 }
 0x941   :  { %v3458_v32 = vpop.eup %3457  ;;  %v2577_v33 = vadd.f32 1.0, %v3456_v29 }
 0x942   :  { %v3460_v35 = vpop.eup %3459  ;;  %v2619_v36 = vrot.slane %v3458_v32, %v2606_v9 }
 0x943   :  { %3465 = vrcp.f32 %v2577_v33  ;;  %v3462_v38 = vpop.eup %3461  ;;  %v2623_v39 = vrot.slane %v3460_v35, %v2606_v9 }
 0x944   :  { %v2641_v37 = vsel %vm2640_vm6, %v2619_v36, %v2639_v34  ;;  %v3464_v42 = vpop.eup %3463  ;;  %v2627_v43 = vrot.slane %v3462_v38, %v2606_v9 }
 0x945   :  { %v2643_v40 = vsel %vm2642_vm7, %v2623_v39, %v2641_v37  ;;  %v2631_v41 = vrot.slane %v3464_v42, %v2606_v9 }
 0x946   :  { %v2645_v44 = vsel %vm2644_vm8, %v2627_v43, %v2643_v40 }
 0x947   :  { %v2647_v45 = vsel %vm2646_vm9, %v2631_v41, %v2645_v44 }
 0x94d   :  { %v3466_v7 = vpop.eup %3465 }
 0x94e   :  { %v2635_v13 = vrot.slane %v3466_v7, %v2606_v9 }
 0x950   :  { %v2649_v46 = vsel %vm2648_vm10, %v2635_v13, %v2647_v45 }
 0x951   :  { %2652 = vst.msk [vmem:[#allocation18] sm:$0xff] %vm2651_vm11, %v2649_v46 }
 0x952   :  { %3610 = shalt.err (!%p3607_p10)
}
 0x953   :  { %s3611_s16 = scalar_lea.hbm %s4153_s13, 128 }
 0x954   :  { %p3612_p11 = scmp.ne.s32.totalorder %s4153_s13, %s3611_s16  ;;  %p3615_p12 = scmp.lt.u32.totalorder %s3611_s16, %s4153_s13 }
 0x956   :  { %p3617_p13 = pnand %p3615_p12, %p3612_p11 }
 0x958   :  { %3620 = shalt.err (!%p3617_p13)
}
 0x959   :  { %2662 = dma.vmem_to_hbm [thread:$0]  %s2660_s15, 128, %s4153_s13, [#allocation9]  }
 0x95a   :  { %3629 = dma.done.wait [#allocation9], 128  }
 0x95b   :  { %3630 = vsyncadd [#allocation9], 4294967168 }
 0x95c   :  { %2666 = vsyncpa [#allocation8], 1 }
 0x95d   :  { %2667 = vsyncpa [#allocation11], 1 }
 0x95e   :  { %2668 = vsyncpa [#allocation14], 1 }
 0x95f   :  { %2669 = vsyncpa [#allocation17], 1 }
 0x960   :  { %2670 = vsyncpa [#allocation9], 1 }

</bundles_post_ra>
